<compile_context>
chip_gen: v5e
topology: v5e:2x2
jax: 0.10.0
libtpu: 0.0.40
codegen_flags: <defaults>
</compile_context>

<pallas_src>
import functools
import math

import jax
import jax.numpy as jnp
from jax import lax
from jax.experimental import pallas as pl
from jax.experimental.pallas import tpu as pltpu


# ------------------------ generation-aware configuration ------------------------

def _detect_config():
    """Pick VMEM budget / tile targets from the TPU generation at trace time."""
    vmem_cap = None
    try:
        info = pltpu.get_tpu_info()
        vmem_cap = int(getattr(info, "vmem_capacity_bytes", 0)) or None
    except Exception:
        vmem_cap = None

    if vmem_cap is None:
        # Unknown part: conservative settings known to work everywhere.
        return {"vmem_limit": 32 * 1024 * 1024,
                "tm": 256, "tn": 256, "tk": 512, "attn_tq": 128,
                "weight_pipeline": None}
    if vmem_cap >= 100 * 1024 * 1024:
        # v5e / v6e: 128 MiB VMEM -> big tiles, generous scoped budget.
        return {"vmem_limit": 96 * 1024 * 1024,
                "tm": 512, "tn": 512, "tk": 1024, "attn_tq": 256,
                "weight_pipeline": None}
    # v7x: 64 MiB VMEM per TensorCore -> smaller tiles, single-buffer invariant weights.
    return {"vmem_limit": 48 * 1024 * 1024,
            "tm": 256, "tn": 256, "tk": 512, "attn_tq": 128,
            "weight_pipeline": pl.Buffered(1)}


_CFG = _detect_config()


def _tile(dim, target, align):
    """Largest `align`-multiple <= target (or <= 2*target) that divides dim, else dim."""
    if dim <= target:
        return dim
    t = (target // align) * align
    while t >= align:
        if dim % t == 0:
            return t
        t -= align
    t = (target // align) * align + align
    while t <= min(dim, 2 * target):
        if dim % t == 0:
            return t
        t += align
    # TODO(synk): pad awkward dims (masked epilogue) instead of one huge block.
    return dim


# ------------------------------- K-tiled matmul ---------------------------------

def _matmul_kernel(*refs, relu, has_res):
    if has_res:
        x_ref, w_ref, b_ref, res_ref, o_ref, acc_ref = refs
    else:
        x_ref, w_ref, b_ref, o_ref, acc_ref = refs

    @pl.when(pl.program_id(2) == 0)
    def _():
        acc_ref[...] = jnp.zeros_like(acc_ref)

    xv = x_ref[...]
    if xv.dtype != jnp.bfloat16:          # static dtype check, no runtime cost
        xv = xv.astype(jnp.bfloat16)
    acc_ref[...] += jnp.dot(xv, w_ref[...], preferred_element_type=jnp.float32)

    @pl.when(pl.program_id(2) == pl.num_programs(2) - 1)
    def _():
        y = acc_ref[...] + b_ref[...]
        if relu:
            y = jnp.maximum(y, 0.0)
        if has_res:
            y = y + res_ref[...]
        o_ref[...] = y.astype(o_ref.dtype)


def matmul(x, w, b, residual=None, relu=False, out_dtype=jnp.float32):
    """y = x @ w + b [+ residual] [ReLU].  x:[M,K] (bf16 preferred), w:[K,N] bf16, b:[N] f32."""
    M, K = x.shape
    N = w.shape[1]
    tm = _tile(M, _CFG["tm"], 8)
    tn = _tile(N, _CFG["tn"], 128)
    tk = _tile(K, _CFG["tk"], 128)
    has_res = residual is not None

    in_specs = [
        pl.BlockSpec((tm, tk), lambda i, j, k: (i, k)),
        pl.BlockSpec((tk, tn), lambda i, j, k: (k, j)),
        pl.BlockSpec((1, tn), lambda i, j, k: (0, j)),
    ]
    args = [x, w, b.reshape(1, N)]
    if has_res:
        in_specs.append(pl.BlockSpec((tm, tn), lambda i, j, k: (i, j)))
        args.append(residual)

    bytes_acc = (M * K * x.dtype.itemsize + K * N * 2 + N * 4
                 + M * N * jnp.dtype(out_dtype).itemsize
                 + (M * N * 4 if has_res else 0))
    cost = pl.CostEstimate(flops=2 * M * N * K, transcendentals=0,
                           bytes_accessed=bytes_acc)

    return pl.pallas_call(
        functools.partial(_matmul_kernel, relu=relu, has_res=has_res),
        out_shape=jax.ShapeDtypeStruct((M, N), out_dtype),
        grid=(M // tm, N // tn, K // tk),
        in_specs=in_specs,
        out_specs=pl.BlockSpec((tm, tn), lambda i, j, k: (i, j)),
        scratch_shapes=[pltpu.VMEM((tm, tn), jnp.float32)],
        compiler_params=pltpu.CompilerParams(
            dimension_semantics=("parallel", "parallel", "arbitrary"),
            vmem_limit_bytes=_CFG["vmem_limit"]),
        cost_estimate=cost,
    )(*args)


# ---------------------- fused LayerNorm -> matmul (Q proj) ----------------------

def _ln_matmul_kernel(x_ref, g_ref, bln_ref, w_ref, b_ref, o_ref, *, eps, d):
    x = x_ref[...]
    mean = jnp.mean(x, axis=-1, keepdims=True)
    c = x - mean
    var = jnp.sum(c * c, axis=-1, keepdims=True) / (d - 1)   # unbiased, like torch .std()
    std = jnp.sqrt(var)
    # Exact division for LN (approx reciprocal is reserved for the softmax denom).
    h = g_ref[...] * c / (std + eps) + bln_ref[...]
    y = jnp.dot(h.astype(jnp.bfloat16), w_ref[...],
                preferred_element_type=jnp.float32) + b_ref[...]
    o_ref[...] = y.astype(o_ref.dtype)


def ln_matmul(x, g, bln, w, b, eps=1e-6, out_dtype=jnp.bfloat16):
    """y = LayerNorm(x) @ w + b (bf16 output).

    Full-D, full-N blocks: LN needs whole rows, and keeping N un-tiled means the
    normalization is computed exactly once per row tile (no redundant LN work).
    """
    M, D = x.shape
    N = w.shape[1]
    tm = _tile(M, _CFG["tm"], 8)
    wp = _CFG["weight_pipeline"]
    cost = pl.CostEstimate(
        flops=2 * M * N * D + 8 * M * D, transcendentals=M,
        bytes_accessed=M * D * 4 + D * N * 2 + M * N * jnp.dtype(out_dtype).itemsize)
    return pl.pallas_call(
        functools.partial(_ln_matmul_kernel, eps=eps, d=D),
        out_shape=jax.ShapeDtypeStruct((M, N), out_dtype),
        grid=(M // tm,),
        in_specs=[
            pl.BlockSpec((tm, D), lambda i: (i, 0)),
            pl.BlockSpec((1, D), lambda i: (0, 0), pipeline_mode=wp),
            pl.BlockSpec((1, D), lambda i: (0, 0), pipeline_mode=wp),
            pl.BlockSpec((D, N), lambda i: (0, 0), pipeline_mode=wp),
            pl.BlockSpec((1, N), lambda i: (0, 0), pipeline_mode=wp),
        ],
        out_specs=pl.BlockSpec((tm, N), lambda i: (i, 0)),
        compiler_params=pltpu.CompilerParams(
            dimension_semantics=("parallel",),
            vmem_limit_bytes=_CFG["vmem_limit"]),
        cost_estimate=cost,
    )(x, g.reshape(1, D), bln.reshape(1, D), w, b.reshape(1, N))


# --------------------------- multi-head attention -------------------------------

def _attention_kernel(q_ref, kv_ref, b_ref, o_ref, *, n_heads):
    q = q_ref[0]                               # [tq, D] bf16 (1/sqrt(dk) folded into Wq)
    kv = kv_ref[0]                             # [S, 2D] bf16 (K | V fused)
    bias = b_ref[0]                            # [1, S] f32 additive mask (0 / -1e9)
    D = q.shape[-1]
    dk = D // n_heads
    contract_last = (((1,), (1,)), ((), ()))   # q @ k^T without materializing k^T

    head_outs = []
    for h in range(n_heads):                   # heads unrolled inside one grid step
        qh = q[:, h * dk:(h + 1) * dk]
        kh = kv[:, h * dk:(h + 1) * dk]
        vh = kv[:, D + h * dk: D + (h + 1) * dk]
        s = lax.dot_general(qh, kh, contract_last,
                            preferred_element_type=jnp.float32)          # [tq, S]
        s = s + bias                           # additive mask: no compare/select work
        s = s - jnp.max(s, axis=-1, keepdims=True)
        p = jnp.exp(s)
        p = p * pl.reciprocal(jnp.sum(p, axis=-1, keepdims=True), approx=True)
        oh = jnp.dot(p.astype(jnp.bfloat16), vh, preferred_element_type=jnp.float32)
        if dk % 128 == 0:
            # lane-aligned direct store: no concat copy, lower vreg pressure
            o_ref[0, :, h * dk:(h + 1) * dk] = oh.astype(o_ref.dtype)
        else:
            head_outs.append(oh)
    if dk % 128 != 0:
        o_ref[0] = jnp.concatenate(head_outs, axis=-1).astype(o_ref.dtype)


def mha_attention(q, kv, mask_bias, n_heads):
    """q:[B,T,D] bf16, kv:[B,S,2D] bf16 (keys|values), mask_bias:[B,1,S] f32 -> [B,T,D] bf16."""
    B, T, D = q.shape
    S = kv.shape[1]
    tq = _tile(T, _CFG["attn_tq"], 8)
    cost = pl.CostEstimate(
        flops=4 * B * T * S * D,
        transcendentals=B * n_heads * T * S,
        bytes_accessed=B * T * D * 2 + B * S * 2 * D * 2 + B * S * 4 + B * T * D * 2)
    # TODO(synk): for long S, switch to flash-style KV tiling with running max/sum.
    return pl.pallas_call(
        functools.partial(_attention_kernel, n_heads=n_heads),
        out_shape=jax.ShapeDtypeStruct((B, T, D), jnp.bfloat16),
        grid=(B, T // tq),
        in_specs=[
            pl.BlockSpec((1, tq, D), lambda b, t: (b, t, 0)),
            pl.BlockSpec((1, S, 2 * D), lambda b, t: (b, 0, 0)),   # revisited across t
            pl.BlockSpec((1, 1, S), lambda b, t: (b, 0, 0)),       # revisited across t
        ],
        out_specs=pl.BlockSpec((1, tq, D), lambda b, t: (b, t, 0)),
        compiler_params=pltpu.CompilerParams(
            dimension_semantics=("parallel", "parallel"),
            vmem_limit_bytes=_CFG["vmem_limit"]),
        cost_estimate=cost,
    )(q, kv, mask_bias)


# -------------------- fused FFN: LN2 -> W1+ReLU -> W2 -> +x ---------------------

def _ffn_fused_kernel(x_ref, g_ref, bln_ref, w1_ref, b1_ref, w2_ref, b2_ref, o_ref,
                      *, eps, d):
    x = x_ref[...]
    mean = jnp.mean(x, axis=-1, keepdims=True)
    c = x - mean
    var = jnp.sum(c * c, axis=-1, keepdims=True) / (d - 1)
    std = jnp.sqrt(var)
    h = g_ref[...] * c / (std + eps) + bln_ref[...]
    h1 = jnp.dot(h.astype(jnp.bfloat16), w1_ref[...],
                 preferred_element_type=jnp.float32) + b1_ref[...]
    h1 = jnp.maximum(h1, 0.0)                  # [tm, d_ff] stays in VMEM
    y = jnp.dot(h1.astype(jnp.bfloat16), w2_ref[...],
                preferred_element_type=jnp.float32) + b2_ref[...]
    o_ref[...] = x + y                         # fused residual


def _ffn_tiled_kernel(x_ref, g_ref, bln_ref, w1_ref, b1_ref, w2_ref, b2_ref, o_ref,
                      h_ref, acc_ref, *, eps, d):
    k = pl.program_id(1)

    @pl.when(k == 0)
    def _():
        x = x_ref[...]
        mean = jnp.mean(x, axis=-1, keepdims=True)
        c = x - mean
        var = jnp.sum(c * c, axis=-1, keepdims=True) / (d - 1)
        std = jnp.sqrt(var)
        h_ref[...] = (g_ref[...] * c / (std + eps) + bln_ref[...]).astype(jnp.bfloat16)
        acc_ref[...] = jnp.zeros_like(acc_ref)

    h1 = jnp.dot(h_ref[...], w1_ref[...], preferred_element_type=jnp.float32) + b1_ref[...]
    h1 = jnp.maximum(h1, 0.0)
    acc_ref[...] += jnp.dot(h1.astype(jnp.bfloat16), w2_ref[...],
                            preferred_element_type=jnp.float32)

    @pl.when(k == pl.num_programs(1) - 1)
    def _():
        o_ref[...] = x_ref[...] + acc_ref[...] + b2_ref[...]


def ffn(x, g, bln, w1, b1, w2, b2, eps=1e-6):
    """x + W2(ReLU(W1(LayerNorm(x)))); d_ff-tiled accumulation variant under tight VMEM."""
    M, D = x.shape
    d_ff = w1.shape[1]
    tm = _tile(M, _CFG["tm"], 8)
    wp = _CFG["weight_pipeline"]
    cost = pl.CostEstimate(
        flops=4 * M * D * d_ff + 10 * M * D,
        transcendentals=M,
        bytes_accessed=2 * M * D * 4 + 2 * D * d_ff * 2 + (d_ff + 3 * D) * 4)

    # Resident-weight footprint: W1+W2 (bf16) + [tm, d_ff] hidden + x/out/LN tiles.
    resident = 2 * D * d_ff * 2 + tm * d_ff * 4 + 3 * tm * D * 4
    if resident <= _CFG["vmem_limit"] // 2:
        # Fully fused path (v5e/v6e always; v7x at small/medium d_ff).
        return pl.pallas_call(
            functools.partial(_ffn_fused_kernel, eps=eps, d=D),
            out_shape=jax.ShapeDtypeStruct((M, D), jnp.float32),
            grid=(M // tm,),
            in_specs=[
                pl.BlockSpec((tm, D), lambda i: (i, 0)),
                pl.BlockSpec((1, D), lambda i: (0, 0), pipeline_mode=wp),
                pl.BlockSpec((1, D), lambda i: (0, 0), pipeline_mode=wp),
                pl.BlockSpec((D, d_ff), lambda i: (0, 0), pipeline_mode=wp),
                pl.BlockSpec((1, d_ff), lambda i: (0, 0), pipeline_mode=wp),
                pl.BlockSpec((d_ff, D), lambda i: (0, 0), pipeline_mode=wp),
                pl.BlockSpec((1, D), lambda i: (0, 0), pipeline_mode=wp),
            ],
            out_specs=pl.BlockSpec((tm, D), lambda i: (i, 0)),
            compiler_params=pltpu.CompilerParams(
                dimension_semantics=("parallel",),
                vmem_limit_bytes=_CFG["vmem_limit"]),
            cost_estimate=cost,
        )(x, g.reshape(1, D), bln.reshape(1, D), w1, b1.reshape(1, d_ff),
          w2, b2.reshape(1, D))

    # d_ff-tiled path (v7x / large d_ff): LN computed once per row tile into a bf16
    # VMEM scratch, W1/W2 streamed over an 'arbitrary' d_ff grid axis, f32 accumulator.
    tf = _tile(d_ff, _CFG["tk"], 128)
    return pl.pallas_call(
        functools.partial(_ffn_tiled_kernel, eps=eps, d=D),
        out_shape=jax.ShapeDtypeStruct((M, D), jnp.float32),
        grid=(M // tm, d_ff // tf),
        in_specs=[
            pl.BlockSpec((tm, D), lambda i, k: (i, 0)),
            pl.BlockSpec((1, D), lambda i, k: (0, 0)),
            pl.BlockSpec((1, D), lambda i, k: (0, 0)),
            pl.BlockSpec((D, tf), lambda i, k: (0, k)),
            pl.BlockSpec((1, tf), lambda i, k: (0, k)),
            pl.BlockSpec((tf, D), lambda i, k: (k, 0)),
            pl.BlockSpec((1, D), lambda i, k: (0, 0)),
        ],
        out_specs=pl.BlockSpec((tm, D), lambda i, k: (i, 0)),
        scratch_shapes=[pltpu.VMEM((tm, D), jnp.bfloat16),
                        pltpu.VMEM((tm, D), jnp.float32)],
        compiler_params=pltpu.CompilerParams(
            dimension_semantics=("parallel", "arbitrary"),
            vmem_limit_bytes=_CFG["vmem_limit"]),
        cost_estimate=cost,
    )(x, g.reshape(1, D), bln.reshape(1, D), w1, b1.reshape(1, d_ff),
      w2, b2.reshape(1, D))


# --------------------------------- parameters -----------------------------------

def _lin_init(key, fan_in, fan_out):
    kw, kb = jax.random.split(key)
    bound = 1.0 / math.sqrt(fan_in)
    w = jax.random.uniform(kw, (fan_in, fan_out), jnp.float32, -bound, bound)
    b = jax.random.uniform(kb, (fan_out,), jnp.float32, -bound, bound)
    return w, b


def init_params(key, d_model, d_ff, n_heads):
    ks = jax.random.split(key, 6)
    wq, bq = _lin_init(ks[0], d_model, d_model)
    wk, bk = _lin_init(ks[1], d_model, d_model)
    wv, bv = _lin_init(ks[2], d_model, d_model)
    wo, bo = _lin_init(ks[3], d_model, d_model)
    w1, b1 = _lin_init(ks[4], d_model, d_ff)
    w2, b2 = _lin_init(ks[5], d_ff, d_model)

    # Fold the 1/sqrt(dk) attention scale into the Q projection (weight AND bias)
    # so the attention kernel never multiplies scores by a scalar.
    scale = 1.0 / math.sqrt(d_model // n_heads)
    wq = wq * scale
    bq = bq * scale

    return {
        "ln1_g": jnp.ones((d_model,), jnp.float32),
        "ln1_b": jnp.zeros((d_model,), jnp.float32),
        "ln2_g": jnp.ones((d_model,), jnp.float32),
        "ln2_b": jnp.zeros((d_model,), jnp.float32),
        "wq": wq.astype(jnp.bfloat16), "bq": bq,
        "wkv": jnp.concatenate([wk, wv], axis=1).astype(jnp.bfloat16),  # fused K|V proj
        "bkv": jnp.concatenate([bk, bv], axis=0),
        "wo": wo.astype(jnp.bfloat16), "bo": bo,
        "w1": w1.astype(jnp.bfloat16), "b1": b1,
        "w2": w2.astype(jnp.bfloat16), "b2": b2,
    }


# -------------------------------- forward pass ----------------------------------

def node_encoder_layer_forward(params, x, m, mask, n_heads):
    """x: [B,T,D] f32, m: [B,S,D] f32, mask: [B,S] {0,1} -> [B,T,D] f32."""
    B, T, D = x.shape
    S = m.shape[1]
    x2 = x.reshape(B * T, D)                                # f32 residual path
    m2 = m.reshape(B * S, D).astype(jnp.bfloat16)           # single bf16 cast of m
    # Additive attention-mask bias (0 keep / -1e9 drop), matching masked_fill(-1e9).
    mask_bias = jnp.where(mask > 0, 0.0, -1e9).astype(jnp.float32).reshape(B, 1, S)

    # TODO(synk): fuse the whole attention sublayer (LN1+Wq, Wkv, attn, Wo+residual)
    # into one pallas_call with resident projection weights to remove the remaining
    # [B,T,D]/[B,S,2D] HBM round-trips between the four calls below.

    # sublayer 0: x + Wo( attn( Wq(LN1(x)), Wk(m), Wv(m), mask ) )
    q = ln_matmul(x2, params["ln1_g"], params["ln1_b"], params["wq"], params["bq"])
    kv = matmul(m2, params["wkv"], params["bkv"], out_dtype=jnp.bfloat16)
    attn = mha_attention(q.reshape(B, T, D), kv.reshape(B, S, 2 * D), mask_bias, n_heads)
    x2 = matmul(attn.reshape(B * T, D), params["wo"], params["bo"],
                residual=x2, out_dtype=jnp.float32)

    # sublayer 1: x + W2( ReLU( W1( LN2(x) ) ) )   (single fused kernel)
    out = ffn(x2, params["ln2_g"], params["ln2_b"],
              params["w1"], params["b1"], params["w2"], params["b2"])
    return out.reshape(B, T, D)


# ------------------------------------ main --------------------------------------

if __name__ == "__main__":
    B, T, S, D, H, D_FF = 2, 8, 16, 32, 4, 64

    key = jax.random.PRNGKey(0)
    kp, kx, km = jax.random.split(key, 3)
    params = init_params(kp, D, D_FF, H)

    x = jax.random.normal(kx, (B, T, D), jnp.float32)
    m = jax.random.normal(km, (B, S, D), jnp.float32)
    mask = jnp.ones((B, S), jnp.int32).at[1, S - 4:].set(0)   # pad last 4 keys of batch 1

    fwd = jax.jit(functools.partial(node_encoder_layer_forward, n_heads=H))
    out = fwd(params, x, m, mask)
    jax.block_until_ready(out)

    assert out.shape == (B, T, D) and out.dtype == jnp.float32
    assert bool(jnp.all(jnp.isfinite(out)))
    print("KERNEL_OK")
</pallas_src>

<mosaic_0001>
module attributes {stable_mosaic.version = 11 : i64} {
  func.func @_matmul_kernel(%arg0: i32, %arg1: i32, %arg2: i32, %arg3: memref<32x32xbf16, #tpu.memory_space<vmem>>, %arg4: memref<32x64xbf16, #tpu.memory_space<vmem>>, %arg5: memref<1x64xf32, #tpu.memory_space<vmem>>, %arg6: memref<32x64xbf16, #tpu.memory_space<vmem>>, %arg7: memref<32x64xf32, #tpu.memory_space<vmem>>) attributes {dimension_semantics = [#tpu.dimension_semantics<parallel>, #tpu.dimension_semantics<parallel>, #tpu.dimension_semantics<arbitrary>], iteration_bounds = array<i64: 1, 1, 1>, scalar_prefetch = 0 : i64, scratch_operands = 1 : i64, tpu.core_type = #tpu.core_type<tc>, window_params = [{transform_indices = @transform_0, window_bounds = array<i64: 32, 32>}, {transform_indices = @transform_1, window_bounds = array<i64: 32, 64>}, {transform_indices = @transform_2, window_bounds = array<i64: 1, 64>}, {transform_indices = @transform_3, window_bounds = array<i64: 32, 64>}]} {
    %c0_i32 = arith.constant 0 : i32
    %0 = arith.cmpi eq, %arg2, %c0_i32 : i32
    %1 = arith.extui %0 : i1 to i32
    %c0_i32_0 = arith.constant 0 : i32
    %2 = arith.cmpi ne, %1, %c0_i32_0 : i32
    scf.if %2 {
      %cst_10 = arith.constant 0.000000e+00 : f32
      %12 = vector.broadcast %cst_10 : f32 to vector<32x64xf32>
      %c0_11 = arith.constant 0 : index
      %c0_12 = arith.constant 0 : index
      %13 = vector.load %arg7[%c0_11, %c0_12] : memref<32x64xf32, #tpu.memory_space<vmem>>, vector<32x64xf32>
      tpu.vector_store %arg7[%c0_11, %c0_12], %12 {strides = array<i32>} : memref<32x64xf32, #tpu.memory_space<vmem>>, vector<32x64xf32>,
    } else {
    }
    %c0 = arith.constant 0 : index
    %c0_1 = arith.constant 0 : index
    %3 = vector.load %arg3[%c0, %c0_1] : memref<32x32xbf16, #tpu.memory_space<vmem>>, vector<32x32xbf16>
    %c0_2 = arith.constant 0 : index
    %c0_3 = arith.constant 0 : index
    %4 = vector.load %arg7[%c0_2, %c0_3] : memref<32x64xf32, #tpu.memory_space<vmem>>, vector<32x64xf32>
    %c0_4 = arith.constant 0 : index
    %c0_5 = arith.constant 0 : index
    %5 = vector.load %arg4[%c0_4, %c0_5] : memref<32x64xbf16, #tpu.memory_space<vmem>>, vector<32x64xbf16>
    %cst = arith.constant dense<0.000000e+00> : vector<32x64xf32>
    %6 = tpu.matmul %3, %5, %cst {dimension_numbers = #tpu.dot_dimension_numbers<[1], [0], [0], [1], [0, 0, 1, 1], [], []>} : vector<32x32xbf16>, vector<32x64xbf16>, vector<32x64xf32> -> vector<32x64xf32>
    %7 = arith.addf %4, %6 : vector<32x64xf32>
    %c0_6 = arith.constant 0 : index
    %c0_7 = arith.constant 0 : index
    %8 = vector.load %arg7[%c0_6, %c0_7] : memref<32x64xf32, #tpu.memory_space<vmem>>, vector<32x64xf32>
    tpu.vector_store %arg7[%c0_6, %c0_7], %7 {strides = array<i32>} : memref<32x64xf32, #tpu.memory_space<vmem>>, vector<32x64xf32>,
    %c0_i32_8 = arith.constant 0 : i32
    %9 = arith.cmpi eq, %arg2, %c0_i32_8 : i32
    %10 = arith.extui %9 : i1 to i32
    %c0_i32_9 = arith.constant 0 : i32
    %11 = arith.cmpi ne, %10, %c0_i32_9 : i32
    scf.if %11 {
      %c0_10 = arith.constant 0 : index
      %c0_11 = arith.constant 0 : index
      %12 = vector.load %arg7[%c0_10, %c0_11] : memref<32x64xf32, #tpu.memory_space<vmem>>, vector<32x64xf32>
      %c0_12 = arith.constant 0 : index
      %c0_13 = arith.constant 0 : index
      %13 = vector.load %arg5[%c0_12, %c0_13] : memref<1x64xf32, #tpu.memory_space<vmem>>, vector<1x64xf32>
      %14 = vector.broadcast %13 : vector<1x64xf32> to vector<32x64xf32>
      %15 = arith.addf %12, %14 : vector<32x64xf32>
      %16 = arith.truncf %15 : vector<32x64xf32> to vector<32x64xbf16>
      %c0_14 = arith.constant 0 : index
      %c0_15 = arith.constant 0 : index
      %17 = vector.load %arg6[%c0_14, %c0_15] : memref<32x64xbf16, #tpu.memory_space<vmem>>, vector<32x64xbf16>
      tpu.vector_store %arg6[%c0_14, %c0_15], %16 {strides = array<i32>} : memref<32x64xbf16, #tpu.memory_space<vmem>>, vector<32x64xbf16>,
    } else {
    }
    return
  }
  func.func @transform_0(%arg0: i32, %arg1: i32, %arg2: i32) -> (i32, i32) {
    %c0_i32 = arith.constant 0 : i32
    return %arg0, %arg2 : i32, i32
  }
  func.func @transform_1(%arg0: i32, %arg1: i32, %arg2: i32) -> (i32, i32) {
    %c0_i32 = arith.constant 0 : i32
    return %arg2, %arg1 : i32, i32
  }
  func.func @transform_2(%arg0: i32, %arg1: i32, %arg2: i32) -> (i32, i32) {
    %c0_i32 = arith.constant 0 : i32
    %c0_i32_0 = arith.constant 0 : i32
    return %c0_i32, %arg1 : i32, i32
  }
  func.func @transform_3(%arg0: i32, %arg1: i32, %arg2: i32) -> (i32, i32) {
    %c0_i32 = arith.constant 0 : i32
    return %arg0, %arg1 : i32, i32
  }
}

module attributes {stable_mosaic.version = 11 : i64} {
  func.func @_ln_matmul_kernel(%arg0: i32, %arg1: memref<16x32xf32, #tpu.memory_space<vmem>>, %arg2: memref<1x32xf32, #tpu.memory_space<vmem>>, %arg3: memref<1x32xf32, #tpu.memory_space<vmem>>, %arg4: memref<32x32xbf16, #tpu.memory_space<vmem>>, %arg5: memref<1x32xf32, #tpu.memory_space<vmem>>, %arg6: memref<16x32xbf16, #tpu.memory_space<vmem>>) attributes {dimension_semantics = [#tpu.dimension_semantics<parallel>], iteration_bounds = array<i64: 1>, scalar_prefetch = 0 : i64, scratch_operands = 0 : i64, tpu.core_type = #tpu.core_type<tc>, window_params = [{transform_indices = @transform_0, window_bounds = array<i64: 16, 32>}, {pipeline_mode = #tpu.pipeline_mode<synchronous>, transform_indices = @transform_1, window_bounds = array<i64: 1, 32>}, {pipeline_mode = #tpu.pipeline_mode<synchronous>, transform_indices = @transform_2, window_bounds = array<i64: 1, 32>}, {pipeline_mode = #tpu.pipeline_mode<synchronous>, transform_indices = @transform_3, window_bounds = array<i64: 32, 32>}, {pipeline_mode = #tpu.pipeline_mode<synchronous>, transform_indices = @transform_4, window_bounds = array<i64: 1, 32>}, {transform_indices = @transform_5, window_bounds = array<i64: 16, 32>}]} {
    %c0 = arith.constant 0 : index
    %c0_0 = arith.constant 0 : index
    %0 = vector.load %arg1[%c0, %c0_0] : memref<16x32xf32, #tpu.memory_space<vmem>>, vector<16x32xf32>
    %cst = arith.constant dense<0.000000e+00> : vector<16xf32>
    %1 = vector.multi_reduction <add>, %0, %cst [1] : vector<16x32xf32> to vector<16xf32>
    %2 = vector.shape_cast %1 : vector<16xf32> to vector<16x1xf32>
    %cst_1 = arith.constant 3.200000e+01 : f32
    %3 = vector.broadcast %cst_1 : f32 to vector<16x1xf32>
    %4 = arith.divf %2, %3 : vector<16x1xf32>
    %5 = vector.broadcast %4 : vector<16x1xf32> to vector<16x32xf32>
    %6 = arith.subf %0, %5 : vector<16x32xf32>
    %7 = arith.mulf %6, %6 : vector<16x32xf32>
    %cst_2 = arith.constant dense<0.000000e+00> : vector<16xf32>
    %8 = vector.multi_reduction <add>, %7, %cst_2 [1] : vector<16x32xf32> to vector<16xf32>
    %9 = vector.shape_cast %8 : vector<16xf32> to vector<16x1xf32>
    %cst_3 = arith.constant 3.100000e+01 : f32
    %10 = vector.broadcast %cst_3 : f32 to vector<16x1xf32>
    %11 = arith.divf %9, %10 : vector<16x1xf32>
    %12 = math.sqrt %11 : vector<16x1xf32>
    %c0_4 = arith.constant 0 : index
    %c0_5 = arith.constant 0 : index
    %13 = vector.load %arg2[%c0_4, %c0_5] : memref<1x32xf32, #tpu.memory_space<vmem>>, vector<1x32xf32>
    %14 = vector.broadcast %13 : vector<1x32xf32> to vector<16x32xf32>
    %15 = arith.mulf %14, %6 : vector<16x32xf32>
    %cst_6 = arith.constant 9.99999997E-7 : f32
    %16 = vector.broadcast %cst_6 : f32 to vector<16x1xf32>
    %17 = arith.addf %12, %16 : vector<16x1xf32>
    %18 = vector.broadcast %17 : vector<16x1xf32> to vector<16x32xf32>
    %19 = arith.divf %15, %18 : vector<16x32xf32>
    %c0_7 = arith.constant 0 : index
    %c0_8 = arith.constant 0 : index
    %20 = vector.load %arg3[%c0_7, %c0_8] : memref<1x32xf32, #tpu.memory_space<vmem>>, vector<1x32xf32>
    %21 = vector.broadcast %20 : vector<1x32xf32> to vector<16x32xf32>
    %22 = arith.addf %19, %21 : vector<16x32xf32>
    %23 = arith.truncf %22 : vector<16x32xf32> to vector<16x32xbf16>
    %c0_9 = arith.constant 0 : index
    %c0_10 = arith.constant 0 : index
    %24 = vector.load %arg4[%c0_9, %c0_10] : memref<32x32xbf16, #tpu.memory_space<vmem>>, vector<32x32xbf16>
    %cst_11 = arith.constant dense<0.000000e+00> : vector<16x32xf32>
    %25 = tpu.matmul %23, %24, %cst_11 {dimension_numbers = #tpu.dot_dimension_numbers<[1], [0], [0], [1], [0, 0, 1, 1], [], []>} : vector<16x32xbf16>, vector<32x32xbf16>, vector<16x32xf32> -> vector<16x32xf32>
    %c0_12 = arith.constant 0 : index
    %c0_13 = arith.constant 0 : index
    %26 = vector.load %arg5[%c0_12, %c0_13] : memref<1x32xf32, #tpu.memory_space<vmem>>, vector<1x32xf32>
    %27 = vector.broadcast %26 : vector<1x32xf32> to vector<16x32xf32>
    %28 = arith.addf %25, %27 : vector<16x32xf32>
    %29 = arith.truncf %28 : vector<16x32xf32> to vector<16x32xbf16>
    %c0_14 = arith.constant 0 : index
    %c0_15 = arith.constant 0 : index
    %30 = vector.load %arg6[%c0_14, %c0_15] : memref<16x32xbf16, #tpu.memory_space<vmem>>, vector<16x32xbf16>
    tpu.vector_store %arg6[%c0_14, %c0_15], %29 {strides = array<i32>} : memref<16x32xbf16, #tpu.memory_space<vmem>>, vector<16x32xbf16>,
    return
  }
  func.func @transform_0(%arg0: i32) -> (i32, i32) {
    %c0_i32 = arith.constant 0 : i32
    %c0_i32_0 = arith.constant 0 : i32
    return %arg0, %c0_i32 : i32, i32
  }
  func.func @transform_1(%arg0: i32) -> (i32, i32) {
    %c0_i32 = arith.constant 0 : i32
    %c0_i32_0 = arith.constant 0 : i32
    %c0_i32_1 = arith.constant 0 : i32
    return %c0_i32, %c0_i32_0 : i32, i32
  }
  func.func @transform_2(%arg0: i32) -> (i32, i32) {
    %c0_i32 = arith.constant 0 : i32
    %c0_i32_0 = arith.constant 0 : i32
    %c0_i32_1 = arith.constant 0 : i32
    return %c0_i32, %c0_i32_0 : i32, i32
  }
  func.func @transform_3(%arg0: i32) -> (i32, i32) {
    %c0_i32 = arith.constant 0 : i32
    %c0_i32_0 = arith.constant 0 : i32
    %c0_i32_1 = arith.constant 0 : i32
    return %c0_i32, %c0_i32_0 : i32, i32
  }
  func.func @transform_4(%arg0: i32) -> (i32, i32) {
    %c0_i32 = arith.constant 0 : i32
    %c0_i32_0 = arith.constant 0 : i32
    %c0_i32_1 = arith.constant 0 : i32
    return %c0_i32, %c0_i32_0 : i32, i32
  }
  func.func @transform_5(%arg0: i32) -> (i32, i32) {
    %c0_i32 = arith.constant 0 : i32
    %c0_i32_0 = arith.constant 0 : i32
    return %arg0, %c0_i32 : i32, i32
  }
}

module attributes {stable_mosaic.version = 11 : i64} {
  func.func @_matmul_kernel(%arg0: i32, %arg1: i32, %arg2: i32, %arg3: memref<16x32xbf16, #tpu.memory_space<vmem>>, %arg4: memref<32x32xbf16, #tpu.memory_space<vmem>>, %arg5: memref<1x32xf32, #tpu.memory_space<vmem>>, %arg6: memref<16x32xf32, #tpu.memory_space<vmem>>, %arg7: memref<16x32xf32, #tpu.memory_space<vmem>>, %arg8: memref<16x32xf32, #tpu.memory_space<vmem>>) attributes {dimension_semantics = [#tpu.dimension_semantics<parallel>, #tpu.dimension_semantics<parallel>, #tpu.dimension_semantics<arbitrary>], iteration_bounds = array<i64: 1, 1, 1>, scalar_prefetch = 0 : i64, scratch_operands = 1 : i64, tpu.core_type = #tpu.core_type<tc>, window_params = [{transform_indices = @transform_0, window_bounds = array<i64: 16, 32>}, {transform_indices = @transform_1, window_bounds = array<i64: 32, 32>}, {transform_indices = @transform_2, window_bounds = array<i64: 1, 32>}, {transform_indices = @transform_3, window_bounds = array<i64: 16, 32>}, {transform_indices = @transform_4, window_bounds = array<i64: 16, 32>}]} {
    %c0_i32 = arith.constant 0 : i32
    %0 = arith.cmpi eq, %arg2, %c0_i32 : i32
    %1 = arith.extui %0 : i1 to i32
    %c0_i32_0 = arith.constant 0 : i32
    %2 = arith.cmpi ne, %1, %c0_i32_0 : i32
    scf.if %2 {
      %cst_10 = arith.constant 0.000000e+00 : f32
      %12 = vector.broadcast %cst_10 : f32 to vector<16x32xf32>
      %c0_11 = arith.constant 0 : index
      %c0_12 = arith.constant 0 : index
      %13 = vector.load %arg8[%c0_11, %c0_12] : memref<16x32xf32, #tpu.memory_space<vmem>>, vector<16x32xf32>
      tpu.vector_store %arg8[%c0_11, %c0_12], %12 {strides = array<i32>} : memref<16x32xf32, #tpu.memory_space<vmem>>, vector<16x32xf32>,
    } else {
    }
    %c0 = arith.constant 0 : index
    %c0_1 = arith.constant 0 : index
    %3 = vector.load %arg3[%c0, %c0_1] : memref<16x32xbf16, #tpu.memory_space<vmem>>, vector<16x32xbf16>
    %c0_2 = arith.constant 0 : index
    %c0_3 = arith.constant 0 : index
    %4 = vector.load %arg8[%c0_2, %c0_3] : memref<16x32xf32, #tpu.memory_space<vmem>>, vector<16x32xf32>
    %c0_4 = arith.constant 0 : index
    %c0_5 = arith.constant 0 : index
    %5 = vector.load %arg4[%c0_4, %c0_5] : memref<32x32xbf16, #tpu.memory_space<vmem>>, vector<32x32xbf16>
    %cst = arith.constant dense<0.000000e+00> : vector<16x32xf32>
    %6 = tpu.matmul %3, %5, %cst {dimension_numbers = #tpu.dot_dimension_numbers<[1], [0], [0], [1], [0, 0, 1, 1], [], []>} : vector<16x32xbf16>, vector<32x32xbf16>, vector<16x32xf32> -> vector<16x32xf32>
    %7 = arith.addf %4, %6 : vector<16x32xf32>
    %c0_6 = arith.constant 0 : index
    %c0_7 = arith.constant 0 : index
    %8 = vector.load %arg8[%c0_6, %c0_7] : memref<16x32xf32, #tpu.memory_space<vmem>>, vector<16x32xf32>
    tpu.vector_store %arg8[%c0_6, %c0_7], %7 {strides = array<i32>} : memref<16x32xf32, #tpu.memory_space<vmem>>, vector<16x32xf32>,
    %c0_i32_8 = arith.constant 0 : i32
    %9 = arith.cmpi eq, %arg2, %c0_i32_8 : i32
    %10 = arith.extui %9 : i1 to i32
    %c0_i32_9 = arith.constant 0 : i32
    %11 = arith.cmpi ne, %10, %c0_i32_9 : i32
    scf.if %11 {
      %c0_10 = arith.constant 0 : index
      %c0_11 = arith.constant 0 : index
      %12 = vector.load %arg8[%c0_10, %c0_11] : memref<16x32xf32, #tpu.memory_space<vmem>>, vector<16x32xf32>
      %c0_12 = arith.constant 0 : index
      %c0_13 = arith.constant 0 : index
      %13 = vector.load %arg5[%c0_12, %c0_13] : memref<1x32xf32, #tpu.memory_space<vmem>>, vector<1x32xf32>
      %14 = vector.broadcast %13 : vector<1x32xf32> to vector<16x32xf32>
      %15 = arith.addf %12, %14 : vector<16x32xf32>
      %c0_14 = arith.constant 0 : index
      %c0_15 = arith.constant 0 : index
      %16 = vector.load %arg6[%c0_14, %c0_15] : memref<16x32xf32, #tpu.memory_space<vmem>>, vector<16x32xf32>
      %17 = arith.addf %15, %16 : vector<16x32xf32>
      %c0_16 = arith.constant 0 : index
      %c0_17 = arith.constant 0 : index
      %18 = vector.load %arg7[%c0_16, %c0_17] : memref<16x32xf32, #tpu.memory_space<vmem>>, vector<16x32xf32>
      tpu.vector_store %arg7[%c0_16, %c0_17], %17 {strides = array<i32>} : memref<16x32xf32, #tpu.memory_space<vmem>>, vector<16x32xf32>,
    } else {
    }
    return
  }
  func.func @transform_0(%arg0: i32, %arg1: i32, %arg2: i32) -> (i32, i32) {
    %c0_i32 = arith.constant 0 : i32
    return %arg0, %arg2 : i32, i32
  }
  func.func @transform_1(%arg0: i32, %arg1: i32, %arg2: i32) -> (i32, i32) {
    %c0_i32 = arith.constant 0 : i32
    return %arg2, %arg1 : i32, i32
  }
  func.func @transform_2(%arg0: i32, %arg1: i32, %arg2: i32) -> (i32, i32) {
    %c0_i32 = arith.constant 0 : i32
    %c0_i32_0 = arith.constant 0 : i32
    return %c0_i32, %arg1 : i32, i32
  }
  func.func @transform_3(%arg0: i32, %arg1: i32, %arg2: i32) -> (i32, i32) {
    %c0_i32 = arith.constant 0 : i32
    return %arg0, %arg1 : i32, i32
  }
  func.func @transform_4(%arg0: i32, %arg1: i32, %arg2: i32) -> (i32, i32) {
    %c0_i32 = arith.constant 0 : i32
    return %arg0, %arg1 : i32, i32
  }
}

module attributes {stable_mosaic.version = 11 : i64} {
  func.func @_attention_kernel(%arg0: i32, %arg1: i32, %arg2: memref<1x8x32xbf16, #tpu.memory_space<vmem>>, %arg3: memref<1x16x64xbf16, #tpu.memory_space<vmem>>, %arg4: memref<1x1x16xf32, #tpu.memory_space<vmem>>, %arg5: memref<1x8x32xbf16, #tpu.memory_space<vmem>>) attributes {dimension_semantics = [#tpu.dimension_semantics<parallel>, #tpu.dimension_semantics<parallel>], iteration_bounds = array<i64: 2, 1>, scalar_prefetch = 0 : i64, scratch_operands = 0 : i64, tpu.core_type = #tpu.core_type<tc>, window_params = [{transform_indices = @transform_0, window_bounds = array<i64: 1, 8, 32>}, {transform_indices = @transform_1, window_bounds = array<i64: 1, 16, 64>}, {transform_indices = @transform_2, window_bounds = array<i64: 1, 1, 16>}, {transform_indices = @transform_3, window_bounds = array<i64: 1, 8, 32>}]} {
    %c0 = arith.constant 0 : index
    %c0_0 = arith.constant 0 : index
    %c0_1 = arith.constant 0 : index
    %0 = vector.load %arg2[%c0, %c0_0, %c0_1] : memref<1x8x32xbf16, #tpu.memory_space<vmem>>, vector<1x8x32xbf16>
    %1 = vector.shape_cast %0 : vector<1x8x32xbf16> to vector<8x32xbf16>
    %c0_2 = arith.constant 0 : index
    %c0_3 = arith.constant 0 : index
    %c0_4 = arith.constant 0 : index
    %2 = vector.load %arg3[%c0_2, %c0_3, %c0_4] : memref<1x16x64xbf16, #tpu.memory_space<vmem>>, vector<1x16x64xbf16>
    %3 = vector.shape_cast %2 : vector<1x16x64xbf16> to vector<16x64xbf16>
    %c0_5 = arith.constant 0 : index
    %c0_6 = arith.constant 0 : index
    %c0_7 = arith.constant 0 : index
    %4 = vector.load %arg4[%c0_5, %c0_6, %c0_7] : memref<1x1x16xf32, #tpu.memory_space<vmem>>, vector<1x1x16xf32>
    %5 = vector.shape_cast %4 : vector<1x1x16xf32> to vector<1x16xf32>
    %6 = vector.extract_strided_slice %1 {offsets = [0, 0], sizes = [8, 8], strides = [1, 1]} : vector<8x32xbf16> to vector<8x8xbf16>
    %7 = vector.extract_strided_slice %3 {offsets = [0, 0], sizes = [16, 8], strides = [1, 1]} : vector<16x64xbf16> to vector<16x8xbf16>
    %8 = vector.extract_strided_slice %3 {offsets = [0, 32], sizes = [16, 8], strides = [1, 1]} : vector<16x64xbf16> to vector<16x8xbf16>
    %cst = arith.constant dense<0.000000e+00> : vector<8x16xf32>
    %9 = tpu.matmul %6, %7, %cst {dimension_numbers = #tpu.dot_dimension_numbers<[1], [1], [0], [0], [0, 0, 1, 0], [], []>} : vector<8x8xbf16>, vector<16x8xbf16>, vector<8x16xf32> -> vector<8x16xf32>
    %10 = vector.broadcast %5 : vector<1x16xf32> to vector<8x16xf32>
    %11 = arith.addf %9, %10 : vector<8x16xf32>
    %cst_8 = arith.constant dense<0xFF800000> : vector<8xf32>
    %12 = vector.multi_reduction <maximumf>, %11, %cst_8 [1] : vector<8x16xf32> to vector<8xf32>
    %13 = vector.shape_cast %12 : vector<8xf32> to vector<8x1xf32>
    %14 = vector.broadcast %13 : vector<8x1xf32> to vector<8x16xf32>
    %15 = arith.subf %11, %14 : vector<8x16xf32>
    %16 = math.exp %15 : vector<8x16xf32>
    %cst_9 = arith.constant dense<0.000000e+00> : vector<8xf32>
    %17 = vector.multi_reduction <add>, %16, %cst_9 [1] : vector<8x16xf32> to vector<8xf32>
    %18 = vector.shape_cast %17 : vector<8xf32> to vector<8x1xf32>
    %19 = tpu.reciprocal %18 {approx = true} : vector<8x1xf32> -> vector<8x1xf32>
    %20 = vector.broadcast %19 : vector<8x1xf32> to vector<8x16xf32>
    %21 = arith.mulf %16, %20 : vector<8x16xf32>
    %22 = arith.truncf %21 : vector<8x16xf32> to vector<8x16xbf16>
    %cst_10 = arith.constant dense<0.000000e+00> : vector<8x8xf32>
    %23 = tpu.matmul %22, %8, %cst_10 {dimension_numbers = #tpu.dot_dimension_numbers<[1], [0], [0], [1], [0, 0, 1, 1], [], []>} : vector<8x16xbf16>, vector<16x8xbf16>, vector<8x8xf32> -> vector<8x8xf32>
    %24 = vector.extract_strided_slice %1 {offsets = [0, 8], sizes = [8, 8], strides = [1, 1]} : vector<8x32xbf16> to vector<8x8xbf16>
    %25 = vector.extract_strided_slice %3 {offsets = [0, 8], sizes = [16, 8], strides = [1, 1]} : vector<16x64xbf16> to vector<16x8xbf16>
    %26 = vector.extract_strided_slice %3 {offsets = [0, 40], sizes = [16, 8], strides = [1, 1]} : vector<16x64xbf16> to vector<16x8xbf16>
    %cst_11 = arith.constant dense<0.000000e+00> : vector<8x16xf32>
    %27 = tpu.matmul %24, %25, %cst_11 {dimension_numbers = #tpu.dot_dimension_numbers<[1], [1], [0], [0], [0, 0, 1, 0], [], []>} : vector<8x8xbf16>, vector<16x8xbf16>, vector<8x16xf32> -> vector<8x16xf32>
    %28 = vector.broadcast %5 : vector<1x16xf32> to vector<8x16xf32>
    %29 = arith.addf %27, %28 : vector<8x16xf32>
    %cst_12 = arith.constant dense<0xFF800000> : vector<8xf32>
    %30 = vector.multi_reduction <maximumf>, %29, %cst_12 [1] : vector<8x16xf32> to vector<8xf32>
    %31 = vector.shape_cast %30 : vector<8xf32> to vector<8x1xf32>
    %32 = vector.broadcast %31 : vector<8x1xf32> to vector<8x16xf32>
    %33 = arith.subf %29, %32 : vector<8x16xf32>
    %34 = math.exp %33 : vector<8x16xf32>
    %cst_13 = arith.constant dense<0.000000e+00> : vector<8xf32>
    %35 = vector.multi_reduction <add>, %34, %cst_13 [1] : vector<8x16xf32> to vector<8xf32>
    %36 = vector.shape_cast %35 : vector<8xf32> to vector<8x1xf32>
    %37 = tpu.reciprocal %36 {approx = true} : vector<8x1xf32> -> vector<8x1xf32>
    %38 = vector.broadcast %37 : vector<8x1xf32> to vector<8x16xf32>
    %39 = arith.mulf %34, %38 : vector<8x16xf32>
    %40 = arith.truncf %39 : vector<8x16xf32> to vector<8x16xbf16>
    %cst_14 = arith.constant dense<0.000000e+00> : vector<8x8xf32>
    %41 = tpu.matmul %40, %26, %cst_14 {dimension_numbers = #tpu.dot_dimension_numbers<[1], [0], [0], [1], [0, 0, 1, 1], [], []>} : vector<8x16xbf16>, vector<16x8xbf16>, vector<8x8xf32> -> vector<8x8xf32>
    %42 = vector.extract_strided_slice %1 {offsets = [0, 16], sizes = [8, 8], strides = [1, 1]} : vector<8x32xbf16> to vector<8x8xbf16>
    %43 = vector.extract_strided_slice %3 {offsets = [0, 16], sizes = [16, 8], strides = [1, 1]} : vector<16x64xbf16> to vector<16x8xbf16>
    %44 = vector.extract_strided_slice %3 {offsets = [0, 48], sizes = [16, 8], strides = [1, 1]} : vector<16x64xbf16> to vector<16x8xbf16>
    %cst_15 = arith.constant dense<0.000000e+00> : vector<8x16xf32>
    %45 = tpu.matmul %42, %43, %cst_15 {dimension_numbers = #tpu.dot_dimension_numbers<[1], [1], [0], [0], [0, 0, 1, 0], [], []>} : vector<8x8xbf16>, vector<16x8xbf16>, vector<8x16xf32> -> vector<8x16xf32>
    %46 = vector.broadcast %5 : vector<1x16xf32> to vector<8x16xf32>
    %47 = arith.addf %45, %46 : vector<8x16xf32>
    %cst_16 = arith.constant dense<0xFF800000> : vector<8xf32>
    %48 = vector.multi_reduction <maximumf>, %47, %cst_16 [1] : vector<8x16xf32> to vector<8xf32>
    %49 = vector.shape_cast %48 : vector<8xf32> to vector<8x1xf32>
    %50 = vector.broadcast %49 : vector<8x1xf32> to vector<8x16xf32>
    %51 = arith.subf %47, %50 : vector<8x16xf32>
    %52 = math.exp %51 : vector<8x16xf32>
    %cst_17 = arith.constant dense<0.000000e+00> : vector<8xf32>
    %53 = vector.multi_reduction <add>, %52, %cst_17 [1] : vector<8x16xf32> to vector<8xf32>
    %54 = vector.shape_cast %53 : vector<8xf32> to vector<8x1xf32>
    %55 = tpu.reciprocal %54 {approx = true} : vector<8x1xf32> -> vector<8x1xf32>
    %56 = vector.broadcast %55 : vector<8x1xf32> to vector<8x16xf32>
    %57 = arith.mulf %52, %56 : vector<8x16xf32>
    %58 = arith.truncf %57 : vector<8x16xf32> to vector<8x16xbf16>
    %cst_18 = arith.constant dense<0.000000e+00> : vector<8x8xf32>
    %59 = tpu.matmul %58, %44, %cst_18 {dimension_numbers = #tpu.dot_dimension_numbers<[1], [0], [0], [1], [0, 0, 1, 1], [], []>} : vector<8x16xbf16>, vector<16x8xbf16>, vector<8x8xf32> -> vector<8x8xf32>
    %60 = vector.extract_strided_slice %1 {offsets = [0, 24], sizes = [8, 8], strides = [1, 1]} : vector<8x32xbf16> to vector<8x8xbf16>
    %61 = vector.extract_strided_slice %3 {offsets = [0, 24], sizes = [16, 8], strides = [1, 1]} : vector<16x64xbf16> to vector<16x8xbf16>
    %62 = vector.extract_strided_slice %3 {offsets = [0, 56], sizes = [16, 8], strides = [1, 1]} : vector<16x64xbf16> to vector<16x8xbf16>
    %cst_19 = arith.constant dense<0.000000e+00> : vector<8x16xf32>
    %63 = tpu.matmul %60, %61, %cst_19 {dimension_numbers = #tpu.dot_dimension_numbers<[1], [1], [0], [0], [0, 0, 1, 0], [], []>} : vector<8x8xbf16>, vector<16x8xbf16>, vector<8x16xf32> -> vector<8x16xf32>
    %64 = vector.broadcast %5 : vector<1x16xf32> to vector<8x16xf32>
    %65 = arith.addf %63, %64 : vector<8x16xf32>
    %cst_20 = arith.constant dense<0xFF800000> : vector<8xf32>
    %66 = vector.multi_reduction <maximumf>, %65, %cst_20 [1] : vector<8x16xf32> to vector<8xf32>
    %67 = vector.shape_cast %66 : vector<8xf32> to vector<8x1xf32>
    %68 = vector.broadcast %67 : vector<8x1xf32> to vector<8x16xf32>
    %69 = arith.subf %65, %68 : vector<8x16xf32>
    %70 = math.exp %69 : vector<8x16xf32>
    %cst_21 = arith.constant dense<0.000000e+00> : vector<8xf32>
    %71 = vector.multi_reduction <add>, %70, %cst_21 [1] : vector<8x16xf32> to vector<8xf32>
    %72 = vector.shape_cast %71 : vector<8xf32> to vector<8x1xf32>
    %73 = tpu.reciprocal %72 {approx = true} : vector<8x1xf32> -> vector<8x1xf32>
    %74 = vector.broadcast %73 : vector<8x1xf32> to vector<8x16xf32>
    %75 = arith.mulf %70, %74 : vector<8x16xf32>
    %76 = arith.truncf %75 : vector<8x16xf32> to vector<8x16xbf16>
    %cst_22 = arith.constant dense<0.000000e+00> : vector<8x8xf32>
    %77 = tpu.matmul %76, %62, %cst_22 {dimension_numbers = #tpu.dot_dimension_numbers<[1], [0], [0], [1], [0, 0, 1, 1], [], []>} : vector<8x16xbf16>, vector<16x8xbf16>, vector<8x8xf32> -> vector<8x8xf32>
    %78 = tpu.concatenate %23, %41, %59, %77 in 1 : vector<8x8xf32>, vector<8x8xf32>, vector<8x8xf32>, vector<8x8xf32> -> vector<8x32xf32>
    %79 = arith.truncf %78 : vector<8x32xf32> to vector<8x32xbf16>
    %c0_23 = arith.constant 0 : index
    %c0_24 = arith.constant 0 : index
    %c0_25 = arith.constant 0 : index
    %80 = vector.load %arg5[%c0_23, %c0_24, %c0_25] : memref<1x8x32xbf16, #tpu.memory_space<vmem>>, vector<1x8x32xbf16>
    %81 = vector.shape_cast %80 : vector<1x8x32xbf16> to vector<8x32xbf16>
    %82 = vector.shape_cast %79 : vector<8x32xbf16> to vector<1x8x32xbf16>
    tpu.vector_store %arg5[%c0_23, %c0_24, %c0_25], %82 {strides = array<i32>} : memref<1x8x32xbf16, #tpu.memory_space<vmem>>, vector<1x8x32xbf16>,
    return
  }
  func.func @transform_0(%arg0: i32, %arg1: i32) -> (i32, i32, i32) {
    %c0_i32 = arith.constant 0 : i32
    %c0_i32_0 = arith.constant 0 : i32
    return %arg0, %arg1, %c0_i32 : i32, i32, i32
  }
  func.func @transform_1(%arg0: i32, %arg1: i32) -> (i32, i32, i32) {
    %c0_i32 = arith.constant 0 : i32
    %c0_i32_0 = arith.constant 0 : i32
    %c0_i32_1 = arith.constant 0 : i32
    return %arg0, %c0_i32, %c0_i32_0 : i32, i32, i32
  }
  func.func @transform_2(%arg0: i32, %arg1: i32) -> (i32, i32, i32) {
    %c0_i32 = arith.constant 0 : i32
    %c0_i32_0 = arith.constant 0 : i32
    %c0_i32_1 = arith.constant 0 : i32
    return %arg0, %c0_i32, %c0_i32_0 : i32, i32, i32
  }
  func.func @transform_3(%arg0: i32, %arg1: i32) -> (i32, i32, i32) {
    %c0_i32 = arith.constant 0 : i32
    %c0_i32_0 = arith.constant 0 : i32
    return %arg0, %arg1, %c0_i32 : i32, i32, i32
  }
}

module attributes {stable_mosaic.version = 11 : i64} {
  func.func @_ffn_fused_kernel(%arg0: i32, %arg1: memref<16x32xf32, #tpu.memory_space<vmem>>, %arg2: memref<1x32xf32, #tpu.memory_space<vmem>>, %arg3: memref<1x32xf32, #tpu.memory_space<vmem>>, %arg4: memref<32x64xbf16, #tpu.memory_space<vmem>>, %arg5: memref<1x64xf32, #tpu.memory_space<vmem>>, %arg6: memref<64x32xbf16, #tpu.memory_space<vmem>>, %arg7: memref<1x32xf32, #tpu.memory_space<vmem>>, %arg8: memref<16x32xf32, #tpu.memory_space<vmem>>) attributes {dimension_semantics = [#tpu.dimension_semantics<parallel>], iteration_bounds = array<i64: 1>, scalar_prefetch = 0 : i64, scratch_operands = 0 : i64, tpu.core_type = #tpu.core_type<tc>, window_params = [{transform_indices = @transform_0, window_bounds = array<i64: 16, 32>}, {pipeline_mode = #tpu.pipeline_mode<synchronous>, transform_indices = @transform_1, window_bounds = array<i64: 1, 32>}, {pipeline_mode = #tpu.pipeline_mode<synchronous>, transform_indices = @transform_2, window_bounds = array<i64: 1, 32>}, {pipeline_mode = #tpu.pipeline_mode<synchronous>, transform_indices = @transform_3, window_bounds = array<i64: 32, 64>}, {pipeline_mode = #tpu.pipeline_mode<synchronous>, transform_indices = @transform_4, window_bounds = array<i64: 1, 64>}, {pipeline_mode = #tpu.pipeline_mode<synchronous>, transform_indices = @transform_5, window_bounds = array<i64: 64, 32>}, {pipeline_mode = #tpu.pipeline_mode<synchronous>, transform_indices = @transform_6, window_bounds = array<i64: 1, 32>}, {transform_indices = @transform_7, window_bounds = array<i64: 16, 32>}]} {
    %c0 = arith.constant 0 : index
    %c0_0 = arith.constant 0 : index
    %0 = vector.load %arg1[%c0, %c0_0] : memref<16x32xf32, #tpu.memory_space<vmem>>, vector<16x32xf32>
    %cst = arith.constant dense<0.000000e+00> : vector<16xf32>
    %1 = vector.multi_reduction <add>, %0, %cst [1] : vector<16x32xf32> to vector<16xf32>
    %2 = vector.shape_cast %1 : vector<16xf32> to vector<16x1xf32>
    %cst_1 = arith.constant 3.200000e+01 : f32
    %3 = vector.broadcast %cst_1 : f32 to vector<16x1xf32>
    %4 = arith.divf %2, %3 : vector<16x1xf32>
    %5 = vector.broadcast %4 : vector<16x1xf32> to vector<16x32xf32>
    %6 = arith.subf %0, %5 : vector<16x32xf32>
    %7 = arith.mulf %6, %6 : vector<16x32xf32>
    %cst_2 = arith.constant dense<0.000000e+00> : vector<16xf32>
    %8 = vector.multi_reduction <add>, %7, %cst_2 [1] : vector<16x32xf32> to vector<16xf32>
    %9 = vector.shape_cast %8 : vector<16xf32> to vector<16x1xf32>
    %cst_3 = arith.constant 3.100000e+01 : f32
    %10 = vector.broadcast %cst_3 : f32 to vector<16x1xf32>
    %11 = arith.divf %9, %10 : vector<16x1xf32>
    %12 = math.sqrt %11 : vector<16x1xf32>
    %c0_4 = arith.constant 0 : index
    %c0_5 = arith.constant 0 : index
    %13 = vector.load %arg2[%c0_4, %c0_5] : memref<1x32xf32, #tpu.memory_space<vmem>>, vector<1x32xf32>
    %14 = vector.broadcast %13 : vector<1x32xf32> to vector<16x32xf32>
    %15 = arith.mulf %14, %6 : vector<16x32xf32>
    %cst_6 = arith.constant 9.99999997E-7 : f32
    %16 = vector.broadcast %cst_6 : f32 to vector<16x1xf32>
    %17 = arith.addf %12, %16 : vector<16x1xf32>
    %18 = vector.broadcast %17 : vector<16x1xf32> to vector<16x32xf32>
    %19 = arith.divf %15, %18 : vector<16x32xf32>
    %c0_7 = arith.constant 0 : index
    %c0_8 = arith.constant 0 : index
    %20 = vector.load %arg3[%c0_7, %c0_8] : memref<1x32xf32, #tpu.memory_space<vmem>>, vector<1x32xf32>
    %21 = vector.broadcast %20 : vector<1x32xf32> to vector<16x32xf32>
    %22 = arith.addf %19, %21 : vector<16x32xf32>
    %23 = arith.truncf %22 : vector<16x32xf32> to vector<16x32xbf16>
    %c0_9 = arith.constant 0 : index
    %c0_10 = arith.constant 0 : index
    %24 = vector.load %arg4[%c0_9, %c0_10] : memref<32x64xbf16, #tpu.memory_space<vmem>>, vector<32x64xbf16>
    %cst_11 = arith.constant dense<0.000000e+00> : vector<16x64xf32>
    %25 = tpu.matmul %23, %24, %cst_11 {dimension_numbers = #tpu.dot_dimension_numbers<[1], [0], [0], [1], [0, 0, 1, 1], [], []>} : vector<16x32xbf16>, vector<32x64xbf16>, vector<16x64xf32> -> vector<16x64xf32>
    %c0_12 = arith.constant 0 : index
    %c0_13 = arith.constant 0 : index
    %26 = vector.load %arg5[%c0_12, %c0_13] : memref<1x64xf32, #tpu.memory_space<vmem>>, vector<1x64xf32>
    %27 = vector.broadcast %26 : vector<1x64xf32> to vector<16x64xf32>
    %28 = arith.addf %25, %27 : vector<16x64xf32>
    %cst_14 = arith.constant 0.000000e+00 : f32
    %29 = vector.broadcast %cst_14 : f32 to vector<16x64xf32>
    %30 = arith.maximumf %28, %29 : vector<16x64xf32>
    %31 = arith.truncf %30 : vector<16x64xf32> to vector<16x64xbf16>
    %c0_15 = arith.constant 0 : index
    %c0_16 = arith.constant 0 : index
    %32 = vector.load %arg6[%c0_15, %c0_16] : memref<64x32xbf16, #tpu.memory_space<vmem>>, vector<64x32xbf16>
    %cst_17 = arith.constant dense<0.000000e+00> : vector<16x32xf32>
    %33 = tpu.matmul %31, %32, %cst_17 {dimension_numbers = #tpu.dot_dimension_numbers<[1], [0], [0], [1], [0, 0, 1, 1], [], []>} : vector<16x64xbf16>, vector<64x32xbf16>, vector<16x32xf32> -> vector<16x32xf32>
    %c0_18 = arith.constant 0 : index
    %c0_19 = arith.constant 0 : index
    %34 = vector.load %arg7[%c0_18, %c0_19] : memref<1x32xf32, #tpu.memory_space<vmem>>, vector<1x32xf32>
    %35 = vector.broadcast %34 : vector<1x32xf32> to vector<16x32xf32>
    %36 = arith.addf %33, %35 : vector<16x32xf32>
    %37 = arith.addf %0, %36 : vector<16x32xf32>
    %c0_20 = arith.constant 0 : index
    %c0_21 = arith.constant 0 : index
    %38 = vector.load %arg8[%c0_20, %c0_21] : memref<16x32xf32, #tpu.memory_space<vmem>>, vector<16x32xf32>
    tpu.vector_store %arg8[%c0_20, %c0_21], %37 {strides = array<i32>} : memref<16x32xf32, #tpu.memory_space<vmem>>, vector<16x32xf32>,
    return
  }
  func.func @transform_0(%arg0: i32) -> (i32, i32) {
    %c0_i32 = arith.constant 0 : i32
    %c0_i32_0 = arith.constant 0 : i32
    return %arg0, %c0_i32 : i32, i32
  }
  func.func @transform_1(%arg0: i32) -> (i32, i32) {
    %c0_i32 = arith.constant 0 : i32
    %c0_i32_0 = arith.constant 0 : i32
    %c0_i32_1 = arith.constant 0 : i32
    return %c0_i32, %c0_i32_0 : i32, i32
  }
  func.func @transform_2(%arg0: i32) -> (i32, i32) {
    %c0_i32 = arith.constant 0 : i32
    %c0_i32_0 = arith.constant 0 : i32
    %c0_i32_1 = arith.constant 0 : i32
    return %c0_i32, %c0_i32_0 : i32, i32
  }
  func.func @transform_3(%arg0: i32) -> (i32, i32) {
    %c0_i32 = arith.constant 0 : i32
    %c0_i32_0 = arith.constant 0 : i32
    %c0_i32_1 = arith.constant 0 : i32
    return %c0_i32, %c0_i32_0 : i32, i32
  }
  func.func @transform_4(%arg0: i32) -> (i32, i32) {
    %c0_i32 = arith.constant 0 : i32
    %c0_i32_0 = arith.constant 0 : i32
    %c0_i32_1 = arith.constant 0 : i32
    return %c0_i32, %c0_i32_0 : i32, i32
  }
  func.func @transform_5(%arg0: i32) -> (i32, i32) {
    %c0_i32 = arith.constant 0 : i32
    %c0_i32_0 = arith.constant 0 : i32
    %c0_i32_1 = arith.constant 0 : i32
    return %c0_i32, %c0_i32_0 : i32, i32
  }
  func.func @transform_6(%arg0: i32) -> (i32, i32) {
    %c0_i32 = arith.constant 0 : i32
    %c0_i32_0 = arith.constant 0 : i32
    %c0_i32_1 = arith.constant 0 : i32
    return %c0_i32, %c0_i32_0 : i32, i32
  }
  func.func @transform_7(%arg0: i32) -> (i32, i32) {
    %c0_i32 = arith.constant 0 : i32
    %c0_i32_0 = arith.constant 0 : i32
    return %arg0, %c0_i32 : i32, i32
  }
}

</mosaic_0001>

<bundles_post_ra>
// kernel: node_encoder_layer_forward.8
= control target key start
LH: loop header
LB: loop body
LE: loop exit
PB: predicated region body
PF: predicated region fallthrough
CT: control target
= control target key end

     0   :  { %vm22_vm0 = vcmask 261120   ;;  %v111_v1 = vmov 0.0   ;;  %s168_s1 = inlined_call_operand.vmem [shape: bf16[32,32], index: 1, kind: input, shape index: {}]   ;;  %s169_s2 = inlined_call_operand.vmem [shape: f32[1,32], index: 2, kind: input, shape index: {}]   ;;  %s170_s0 = inlined_call_operand.vmem [shape: bf16[16,32], index: 0, kind: input, shape index: {}]   ;;  %s171_s3 = inlined_call_operand.vmem [shape: f32[16,32], index: 3, kind: input, shape index: {}]   ;;  %s172_s4 = inlined_call_operand.vmem [shape: f32[16,32], index: 4, kind: output, shape index: {}]  }
   0x1   :  { %v108_v0 = vld [vmem:[%s168_s1 + $0x8] sm:$0xff]  ;;  %23 = vst.msk [vmem:[#allocation2] sm:$0xff] %vm22_vm0, %v111_v1  ;;  %v107_v2 = vld [vmem:[%s168_s1] sm:$0xff] }
   0x2   :  { %24 = vst.msk [vmem:[#allocation2 + $0x8] sm:$0xff] %vm22_vm0, %v111_v1  ;;  %60 = vmatpush.bf16.msra.mxu0 %v108_v0  ;;  %v106_v3 = vld [vmem:[%s170_s0] sm:$0xff]  ;;  %v84_v16 = vld [vmem:[%s171_s3 + $0x8] sm:$0xff] }
   0x3   :  { %v110_v8 = vld [vmem:[%s169_s2] ss:$0 sm:$0xff] }
   0x4   :  { %v83_v12 = vld [vmem:[%s171_s3] sm:$0xff] }
   0x6   :  { %61 = vmatpush.bf16.msra.mxu0 %v107_v2 }
   0x8   :  { %v27_v4 = vld [vmem:[#allocation2] sm:$0xff] }
   0x9   :  { %105 = vmatmul.msk.bf16.vlgmr.msra.gmra.mxu0 %vm22_vm0, %v106_v3  ;;  %v28_v7 = vld [vmem:[#allocation2 + $0x8] sm:$0xff] }
  0x86   :  { %v63_v5 = vpop.f32.mrf.mxu0 }
  0x87   :  { %v68_v6 = vadd.f32 %v63_v5, %v27_v4 }
  0x89   :  { %70 = vst.msk [vmem:[#allocation2] sm:$0xff] %vm22_vm0, %v68_v6 }
  0x8e   :  { %v65_v9 = vpop.f32.mrf.mxu0 }
  0x8f   :  { %v69_v10 = vadd.f32 %v65_v9, %v28_v7 }
  0x90   :  { %v75_v11 = vld [vmem:[#allocation2] sm:$0xff] }
  0x91   :  { %v81_v13 = vadd.f32 %v110_v8, %v75_v11  ;;  %71 = vst.msk [vmem:[#allocation2 + $0x8] sm:$0xff] %vm22_vm0, %v69_v10 }
  0x93   :  { %v85_v14 = vadd.f32 %v83_v12, %v81_v13 }
  0x95   :  { %87 = vst.msk [vmem:[%s172_s4] sm:$0xff] %vm22_vm0, %v85_v14 }
  0x98   :  { %v76_v15 = vld [vmem:[#allocation2 + $0x8] sm:$0xff] }
  0x99   :  { %v82_v17 = vadd.f32 %v110_v8, %v76_v15 }
  0x9b   :  { %v86_v18 = vadd.f32 %v84_v16, %v82_v17 }
  0x9d   :  { %88 = vst.msk [vmem:[%s172_s4 + $0x8] sm:$0xff] %vm22_vm0, %v86_v18 }

// kernel: node_encoder_layer_forward.6
= control target key start
LH: loop header
LB: loop body
LE: loop exit
PB: predicated region body
PF: predicated region fallthrough
CT: control target
= control target key end

     0   :  { %vm19_vm0 = vcmask 523264   ;;  %v147_v1 = vmov 0.0   ;;  %vm58_vm1 = vcmask 261120   ;;  %vm112_vm2 = vcmask 519168   ;;  %s203_s1 = inlined_call_operand.vmem [shape: bf16[32,64], index: 1, kind: input, shape index: {}]   ;;  %s204_s2 = inlined_call_operand.vmem [shape: f32[1,64], index: 2, kind: input, shape index: {}]   ;;  %s205_s0 = inlined_call_operand.vmem [shape: bf16[32,32], index: 0, kind: input, shape index: {}]   ;;  %s206_s3 = inlined_call_operand.vmem [shape: bf16[32,64], index: 3, kind: output, shape index: {}]  }
   0x1   :  { %v142_v0 = vld [vmem:[%s203_s1 + $0x8] sm:$0xff]  ;;  %20 = vst.msk [vmem:[#allocation2] sm:$0xff] %vm19_vm0, %v147_v1  ;;  %v141_v2 = vld [vmem:[%s203_s1] sm:$0xff] }
   0x2   :  { %21 = vst.msk [vmem:[#allocation2 + $0x8] sm:$0xff] %vm19_vm0, %v147_v1  ;;  %71 = vmatpush.bf16.msra.mxu0 %v142_v0  ;;  %143 = vmatpush.bf16.msra.mxu1 %v142_v0  ;;  %v139_v3 = vld [vmem:[%s205_s0] sm:$0xff]  ;;  %v140_v4 = vld [vmem:[%s205_s0 + $0x8] sm:$0xff] }
   0x3   :  { %22 = vst.msk [vmem:[#allocation2 + $0x10] sm:$0xff] %vm19_vm0, %v147_v1  ;;  %v146_v13 = vld [vmem:[%s204_s2] ss:$0 sm:$0xff] }
   0x4   :  { %23 = vst.msk [vmem:[#allocation2 + $0x18] sm:$0xff] %vm19_vm0, %v147_v1 }
   0x6   :  { %72 = vmatpush.bf16.msra.mxu0 %v141_v2  ;;  %144 = vmatpush.bf16.msra.mxu1 %v141_v2 }
   0x8   :  { %v28_v5 = vld [vmem:[#allocation2] sm:$0xff] }
   0x9   :  { %137 = vmatmul.msk.bf16.vlgmr.msra.gmra.mxu0 %vm58_vm1, %v139_v3  ;;  %138 = vmatmul.msk.bf16.vlgmr.msra.gmra.mxu1 %vm58_vm1, %v140_v4  ;;  %v29_v11 = vld [vmem:[#allocation2 + $0x8] sm:$0xff] }
   0xa   :  { %v30_v6 = vld [vmem:[#allocation2 + $0x10] sm:$0xff] }
   0xb   :  { %v31_v12 = vld [vmem:[#allocation2 + $0x18] sm:$0xff] }
  0x86   :  { %v74_v7 = vpop.f32.mrf.mxu0  ;;  %v79_v8 = vpop.f32.mrf.mxu1 }
  0x87   :  { %v84_v9 = vadd.f32 %v74_v7, %v28_v5  ;;  %v86_v10 = vadd.f32 %v79_v8, %v30_v6 }
  0x89   :  { %89 = vst.msk [vmem:[#allocation2] sm:$0xff] %vm19_vm0, %v84_v9 }
  0x8a   :  { %91 = vst.msk [vmem:[#allocation2 + $0x10] sm:$0xff] %vm19_vm0, %v86_v10 }
  0x8e   :  { %v76_v14 = vpop.f32.mrf.mxu0  ;;  %v81_v15 = vpop.f32.mrf.mxu1 }
  0x8f   :  { %v85_v16 = vadd.f32 %v76_v14, %v29_v11  ;;  %v87_v17 = vadd.f32 %v81_v15, %v31_v12 }
  0x90   :  { %v96_v18 = vld [vmem:[#allocation2] sm:$0xff] }
  0x91   :  { %v104_v19 = vadd.f32 %v146_v13, %v96_v18  ;;  %v98_v20 = vld [vmem:[#allocation2 + $0x10] sm:$0xff]  ;;  %90 = vst.msk [vmem:[#allocation2 + $0x8] sm:$0xff] %vm19_vm0, %v85_v16 }
  0x92   :  { %v106_v21 = vadd.f32 %v146_v13, %v98_v20  ;;  %92 = vst.msk [vmem:[#allocation2 + $0x18] sm:$0xff] %vm19_vm0, %v87_v17 }
  0x93   :  { %v108_v22 = vpack.c.bf16 %v104_v19, %v104_v19 }
  0x94   :  { %v110_v23 = vpack.c.bf16 %v106_v21, %v106_v21 }
  0x95   :  { %113 = vst.msk [vmem:[%s206_s3] sm:$0xf] %vm112_vm2, %v108_v22 }
  0x96   :  { %115 = vst.msk [vmem:[%s206_s3 + $0x8] sm:$0xf] %vm112_vm2, %v110_v23 }
  0x98   :  { %v97_v24 = vld [vmem:[#allocation2 + $0x8] sm:$0xff] }
  0x99   :  { %v105_v25 = vadd.f32 %v146_v13, %v97_v24  ;;  %v99_v26 = vld [vmem:[#allocation2 + $0x18] sm:$0xff] }
  0x9a   :  { %v107_v27 = vadd.f32 %v146_v13, %v99_v26 }
  0x9b   :  { %v109_v28 = vpack.c.bf16 %v105_v25, %v105_v25 }
  0x9c   :  { %v111_v29 = vpack.c.bf16 %v107_v27, %v107_v27 }
  0x9d   :  { %114 = vst.msk [vmem:[%s206_s3 + $0x4] sm:$0xf] %vm112_vm2, %v109_v28 }
  0x9e   :  { %116 = vst.msk [vmem:[%s206_s3 + $0xc] sm:$0xf] %vm112_vm2, %v111_v29 }

// kernel: node_encoder_layer_forward.5
= control target key start
LH: loop header
LB: loop body
LE: loop exit
PB: predicated region body
PF: predicated region fallthrough
CT: control target
= control target key end

     0   :  { %10 = vsyncpa [#allocation3], 0  ;;  %s247_s21 = smov [#allocation2]   ;;  %s248_s23 = smov 64   ;;  %s321_s0 = inlined_call_operand.vmem [shape: f32[16,32], index: 0, kind: input, shape index: {}]   ;;  %s322_s1 = inlined_call_operand.vmem [shape: f32[1,32], index: 1, kind: input, shape index: {}]   ;;  %s323_s2 = inlined_call_operand.vmem [shape: f32[1,32], index: 2, kind: input, shape index: {}]   ;;  %s324_s3 = inlined_call_operand.hbm [shape: bf16[32,32], index: 3, kind: input, shape index: {}]   ;;  %s325_s4 = inlined_call_operand.vmem [shape: f32[1,32], index: 4, kind: input, shape index: {}]   ;;  %s326_s5 = inlined_call_operand.vmem [shape: bf16[16,32], index: 5, kind: output, shape index: {}]  }
   0x1   :  { %s21_s20 = sshll.u32 %s324_s3, 4  ;;  %s23_s22 = sshll.u32 %s247_s21, 4  ;;  %s22_s20 = int_to_ptr.hbm [resolvable:$true] %s21_s20  ;;  %s24_s22 = int_to_ptr.vmem [resolvable:$true] %s23_s22 }
   0x2   :  { %s249_s24 = smov 4  }
   0x3   :  { %29 = dma.hbm_to_vmem [thread:$0]  %s22_s20, 256, %s24_s22, [#allocation3], %s248_s23, %s248_s23, %s249_s24  }
   0x4   :  { %245 = dma.done.wait [#allocation3], 256  }
   0x5   :  { %246 = vsyncadd [#allocation3], 4294967040  ;;  %vm39_vm0 = vcmask 261120   ;;  %v37_v0 = vld [vmem:[%s321_s0] sm:$0xff]  ;;  %v38_v2 = vld [vmem:[%s321_s0 + $0x8] sm:$0xff]  ;;  %v250_v4 = vmov 32.0  }
   0x6   :  { %v40_v1 = vsel %vm39_vm0, %v37_v0, 0.0  ;;  %v43_v3 = vsel %vm39_vm0, %v38_v2, 0.0  ;;  %209 = vrcp.f32 %v250_v4  ;;  %v251_v21 = vmov 31.0   ;;  %v200_v28 = vld [vmem:[#allocation2 + $0x8] sm:$0xff]  ;;  %v199_v30 = vld [vmem:[#allocation2] sm:$0xff] }
   0x7   :  { %41 = vadd.xlane.f32.xlu0 %v40_v1  ;;  %211 = vrcp.f32 %v251_v21  ;;  %172 = vmatpush.bf16.msra.mxu0 %v200_v28  ;;  %v206_v1 = vld [vmem:[%s322_s1] ss:$0 sm:$0xff]  ;;  %vm182_vm15 = vcmask 257024  }
   0xb   :  { %173 = vmatpush.bf16.msra.mxu0 %v199_v30 }
   0xc   :  { %v210_v5 = vpop.eup %209 }
   0xd   :  { %v47_v6 = vmul.f32 32.0, %v210_v5  ;;  %vm51_vm1 = vweird.f32 %v210_v5  ;;  %v212_v22 = vpop.eup %211 }
   0xe   :  { %v66_v23 = vmul.f32 31.0, %v212_v22  ;;  %vm70_vm2 = vweird.f32 %v212_v22 }
   0xf   :  { %44 = vadd.xlane.f32.xlu0 %v43_v3  ;;  %v48_v7 = vsub.f32 1.0, %v47_v6 }
  0x10   :  { %v67_v24 = vsub.f32 1.0, %v66_v23 }
  0x11   :  { %v49_v8 = vmul.f32 %v210_v5, %v48_v7 }
  0x12   :  { %v68_v25 = vmul.f32 %v212_v22, %v67_v24 }
  0x13   :  { %v50_v9 = vadd.f32 %v210_v5, %v49_v8 }
  0x14   :  { %v69_v26 = vadd.f32 %v212_v22, %v68_v25 }
  0x15   :  { %v52_v10 = vsel %vm51_vm1, %v210_v5, %v50_v9 }
  0x16   :  { %v71_v27 = vsel %vm70_vm2, %v212_v22, %v69_v26 }
  0x7a   :  { %v42_v11 = vpop.xlane.xlu0 %41 }
  0x7b   :  { %v53_v12 = vmul.f32 %v52_v10, %v42_v11 }
  0x7d   :  { %v293_v13 = vsub.f32 %v37_v0, %v53_v12 }
  0x7f   :  { %v57_v14 = vmul.f32 %v293_v13, %v293_v13  ;;  %v102_v9 = vmul.f32 %v206_v1, %v293_v13  ;;  %v208_v13 = vld [vmem:[%s325_s4] ss:$0 sm:$0xff] }
  0x81   :  { %v59_v15 = vsel %vm39_vm0, %v57_v14, 0.0 }
  0x82   :  { %60 = vadd.xlane.f32.xlu1 %v59_v15  ;;  %v45_v16 = vpop.xlane.xlu0 %44 }
  0x83   :  { %v54_v17 = vmul.f32 %v52_v10, %v45_v16  ;;  %v207_v16 = vld [vmem:[%s323_s2] ss:$0 sm:$0xff] }
  0x85   :  { %v298_v18 = vsub.f32 %v38_v2, %v54_v17 }
  0x87   :  { %v58_v19 = vmul.f32 %v298_v18, %v298_v18  ;;  %v103_v12 = vmul.f32 %v206_v1, %v298_v18 }
  0x89   :  { %v62_v20 = vsel %vm39_vm0, %v58_v19, 0.0 }
  0x8a   :  { %63 = vadd.xlane.f32.xlu1 %v62_v20 }
  0xf5   :  { %v61_v29 = vpop.xlane.xlu1 %60 }
  0xf6   :  { %v72_v31 = vmul.f32 %v71_v27, %v61_v29 }
  0xf8   :  { %213 = vrsqrt.f32 %v72_v31  ;;  %vm81_vm3 = vcmp.eq.f32.partialorder %v72_v31, inf  ;;  %v84_v44 = vand.u32 2147483648, %v72_v31  ;;  %vm83_vm4 = vcmp.eq.f32.partialorder %v72_v31, 0.0 }
  0xfd   :  { %v64_v32 = vpop.xlane.xlu1 %63 }
  0xfe   :  { %v214_v33 = vpop.eup %213  ;;  %v73_v34 = vmul.f32 %v71_v27, %v64_v32 }
  0xff   :  { %v75_v35 = vmul.f32 %v214_v33, %v72_v31 }
 0x100   :  { %215 = vrsqrt.f32 %v73_v34  ;;  %vm93_vm5 = vcmp.eq.f32.partialorder %v73_v34, inf  ;;  %v96_v52 = vand.u32 2147483648, %v73_v34  ;;  %vm95_vm6 = vcmp.eq.f32.partialorder %v73_v34, 0.0 }
 0x101   :  { %v76_v36 = vmul.f32 %v214_v33, %v75_v35 }
 0x103   :  { %v77_v37 = vmul.f32 0.5, %v76_v36 }
 0x105   :  { %v78_v38 = vsub.f32 1.5, %v77_v37 }
 0x106   :  { %v216_v39 = vpop.eup %215 }
 0x107   :  { %v79_v40 = vmul.f32 %v214_v33, %v78_v38  ;;  %v87_v41 = vmul.f32 %v216_v39, %v73_v34 }
 0x109   :  { %v80_v42 = vmul.f32 %v79_v40, %v72_v31  ;;  %v88_v43 = vmul.f32 %v216_v39, %v87_v41 }
 0x10b   :  { %v82_v45 = vsel %vm81_vm3, %v72_v31, %v80_v42  ;;  %v89_v46 = vmul.f32 0.5, %v88_v43 }
 0x10c   :  { %v85_v47 = vsel %vm83_vm4, %v84_v44, %v82_v45 }
 0x10d   :  { %v90_v48 = vsub.f32 1.5, %v89_v46  ;;  %v104_v49 = vadd.f32 1e-06, %v85_v47 }
 0x10f   :  { %v91_v50 = vmul.f32 %v216_v39, %v90_v48  ;;  %217 = vrcp.f32 %v104_v49  ;;  %v117_v62 = vand.u32 2147483648, %v104_v49  ;;  %vm111_vm8 = vweird.f32 %v104_v49 }
 0x110   :  { %v115_v63 = vand.u32 2147483647, %v104_v49 }
 0x111   :  { %v92_v51 = vmul.f32 %v91_v50, %v73_v34  ;;  %v118_v4 = vor.u32 1.1754944e-38, %v117_v62 }
 0x112   :  { %vm116_vm10 = vcmp.eq.f32.partialorder %v115_v63, 8.507059e+37 }
 0x113   :  { %v94_v53 = vsel %vm93_vm5, %v73_v34, %v92_v51 }
 0x114   :  { %v97_v54 = vsel %vm95_vm6, %v96_v52, %v94_v53 }
 0x115   :  { %v218_v55 = vpop.eup %217  ;;  %v105_v56 = vadd.f32 1e-06, %v97_v54 }
 0x116   :  { %v107_v57 = vmul.f32 %v218_v55, %v104_v49  ;;  %vm112_vm7 = vweird.f32 %v218_v55 }
 0x117   :  { %219 = vrcp.f32 %v105_v56  ;;  %vm113_vm9 = vmor %vm111_vm8, %vm112_vm7  ;;  %v132_v5 = vand.u32 2147483648, %v105_v56  ;;  %v130_v7 = vand.u32 2147483647, %v105_v56  ;;  %vm126_vm12 = vweird.f32 %v105_v56 }
 0x118   :  { %v108_v58 = vsub.f32 1.0, %v107_v57 }
 0x119   :  { %v133_v11 = vor.u32 1.1754944e-38, %v132_v5  ;;  %vm131_vm14 = vcmp.eq.f32.partialorder %v130_v7, 8.507059e+37 }
 0x11a   :  { %v109_v59 = vmul.f32 %v218_v55, %v108_v58 }
 0x11c   :  { %v110_v60 = vadd.f32 %v218_v55, %v109_v59 }
 0x11d   :  { %v220_v61 = vpop.eup %219 }
 0x11e   :  { %v122_v0 = vmul.f32 %v220_v61, %v105_v56  ;;  %v114_v2 = vsel %vm113_vm9, %v218_v55, %v110_v60  ;;  %vm127_vm11 = vweird.f32 %v220_v61 }
 0x11f   :  { %v119_v8 = vsel %vm116_vm10, %v118_v4, %v114_v2  ;;  %vm128_vm13 = vmor %vm126_vm12, %vm127_vm11 }
 0x120   :  { %v123_v3 = vsub.f32 1.0, %v122_v0  ;;  %v120_v14 = vmul.f32 %v119_v8, %v102_v9 }
 0x122   :  { %v124_v6 = vmul.f32 %v220_v61, %v123_v3  ;;  %v140_v20 = vadd.f32 %v207_v16, %v120_v14 }
 0x124   :  { %v125_v10 = vadd.f32 %v220_v61, %v124_v6 }
 0x126   :  { %v129_v15 = vsel %vm128_vm13, %v220_v61, %v125_v10 }
 0x127   :  { %v134_v17 = vsel %vm131_vm14, %v133_v11, %v129_v15 }
 0x128   :  { %v135_v19 = vmul.f32 %v134_v17, %v103_v12 }
 0x12a   :  { %v141_v21 = vadd.f32 %v207_v16, %v135_v19 }
 0x12c   :  { %v142_v22 = vpack.c.bf16 %v141_v21, %v140_v20 }
 0x12e   :  { %198 = vmatmul.msk.bf16.vlgmr.msra.gmra.mxu0 %vm39_vm0, %v142_v22 }
 0x1ab   :  { %v175_v23 = vpop.f32.mrf.mxu0 }
 0x1ac   :  { %v176_v18 = vadd.f32 %v208_v13, %v175_v23 }
 0x1ae   :  { %v180_v24 = vpack.c.bf16 %v176_v18, %v176_v18 }
 0x1b0   :  { %183 = vst.msk [vmem:[%s326_s5] sm:$0xf] %vm182_vm15, %v180_v24 }
 0x1b3   :  { %v177_v25 = vpop.f32.mrf.mxu0 }
 0x1b4   :  { %v178_v26 = vadd.f32 %v208_v13, %v177_v25 }
 0x1b6   :  { %v181_v27 = vpack.c.bf16 %v178_v26, %v178_v26 }
 0x1b8   :  { %184 = vst.msk [vmem:[%s326_s5 + $0x4] sm:$0xf] %vm182_vm15, %v181_v27 }
 0x1b9   :  { %189 = vsyncpa [#allocation3], 1 }

// kernel: node_encoder_layer_forward.7
= control target key start
LH: loop header
LB: loop body
LE: loop exit
PB: predicated region body
PF: predicated region fallthrough
CT: control target
= control target key end

     0   :  { %s705_s12 = smov 0   ;;  %s707_s13 = smov 0   ;;  %s788_s0 = inlined_call_operand.vmem [shape: bf16[2,8,32], index: 0, kind: input, shape index: {}]   ;;  %s789_s1 = inlined_call_operand.vmem [shape: bf16[2,16,64], index: 1, kind: input, shape index: {}]   ;;  %s790_s2 = inlined_call_operand.vmem [shape: f32[2,1,16], index: 2, kind: input, shape index: {}]   ;;  %s791_s3 = inlined_call_operand.vmem [shape: bf16[2,8,32], index: 3, kind: output, shape index: {}]  }
   0x1   :  { %s709_s14 = smov 0  }
   0x2 LB: > { %s25_s15 = sadd.s32 1, %s669_s13  ;;  %p579_p0 = scmp.ge.s32.totalorder %s673_s14, 1  ;;  %s673_s14 = sphi %s709_s14, %s13_s14   ;;  %s669_s13 = sphi %s707_s13, %s793_s13   ;;  %s665_s12 = sphi %s705_s12, %s792_s12  }
   0x3   : > { %p27_p1 = scmp.ge.s32.totalorder %s25_s15, 2  ;;  %p173_p2 = scmp.lt.s32.totalorder %s673_s14, 3 }
   0x5   : > { %s795_s15 = smov (%p27_p1, %s25_s15), 0  ;;  %p174_p3 = pnand %p579_p0, %p173_p2 }
   0x6   : > { %p209_p4 = scmp.lt.s32.totalorder (!%p174_p3), %s665_s12, 1  ;;  %s675_s27 = smov (!%p174_p3), 96  }
   0x7   : > { %177 = sbr.rel (%p174_p3) target bundleno = 1079 (0x437), region = 32  ;;  %s676_s28 = smov (!%p174_p3), 112  }
   0x8   : > { %s677_s29 = smov (!%p174_p3), 104   ;;  %s678_s30 = smov (!%p174_p3), 120  }
   0x9   : > { %s679_s4 = smov (!%p174_p3), 88   ;;  %s680_s5 = smov (!%p174_p3), 80  }
   0xa   : > { %s681_s6 = smov (!%p174_p3), 72   ;;  %s682_s7 = smov (!%p174_p3), 8  }
   0xb   : > { %s683_s8 = smov (!%p174_p3), 24   ;;  %s684_s9 = smov (!%p174_p3), 16  }
   0xc   : > { %s797_s12 = smov (!%p209_p4, %s665_s12), 1  ;;  %vm244_vm0 = vcmask 64512   ;;  %vm264_vm1 = vcmask 130048   ;;  %vm475_vm2 = vcmask 195584   ;;  %vm478_vm3 = vcmask 257024  }
   0xd   : > { %s598_s16 = sshll.u32 %s797_s12, 3  ;;  %s223_s22 = scalar_lea.vmem %s790_s2, %s797_s12 }
   0xe   : > { %s220_s19 = scalar_lea.vmem %s789_s1, %s598_s16  ;;  %s580_s23 = sshll.u32 %s797_s12, 2  ;;  %v634_v5 = vld [vmem:[%s223_s22] ss:$0 sm:$0xff] }
   0xf   : > { %v729_v0 = vld [vmem:[%s220_s19] sm:$0xff]  ;;  %s215_s26 = scalar_lea.vmem %s788_s0, %s580_s23  ;;  %s230_s16 = scalar_lea.vmem %s791_s3, %s580_s23 }
  0x10   : > { %v249_v1 = vsel %vm244_vm0, %v729_v0, 0  ;;  %v232_v2 = vld [vmem:[%s215_s26] sm:$0xf]  ;;  %277 = vrot.lane.b32.xlu2 %v729_v0, %s675_s27 }
  0x11   : > { %258 = vmatpush.bf16.xpose.msra.mxu0 %v249_v1  ;;  %v297_v3 = vunpack.c.l.b16 %v232_v2 }
  0x13   : > { %v298_v4 = vpack.c.b16 %v297_v3, %v297_v3 }
  0x18   : > { %588 = vmatmul.msk.bf16.vlgmr.msra.gmra.mxu0 %vm244_vm0, %v232_v2  ;;  %355 = vrot.lane.b32.xlu2 %v729_v0, %s676_s28 }
  0x20   : > { %409 = vrot.lane.b32.xlu2 %v729_v0, %s677_s29 }
  0x28   : > { %353 = vrot.lane.b32.xlu2 %v298_v4, %s676_s28 }
  0x6a   : > { %v278_v10 = vpop.permute.xlu2 %277 }
  0x6b   : > { %290 = vmatpush.bf16.msra.mxu1 %v278_v10 }
  0x72   : > { %v356_v11 = vpop.permute.xlu2 %355 }
  0x73   : > { %v361_v21 = vsel %vm244_vm0, %v356_v11, 0 }
  0x74   : > { %370 = vmatpush.bf16.xpose.msrb.mxu1 %v361_v21 }
  0x7a   : > { %v410_v15 = vpop.permute.xlu2 %409 }
  0x7b   : > { %v415_v16 = vsel %vm244_vm0, %v410_v15, 0 }
  0x7c   : > { %424 = vmatpush.bf16.xpose.msrb.mxu0 %v415_v16 }
  0x82   : > { %v354_v28 = vpop.permute.xlu2 %353 }
  0x95   : > { %v260_v6 = vpop.f32.mrf.mxu0 }
  0x96   : > { %v261_v7 = vadd.f32 %v634_v5, %v260_v6 }
  0x98   : > { %v265_v8 = vsel %vm264_vm1, %v261_v7, -inf }
  0x99   : > { %266 = vmax.xlane.f32.xlu0 %v265_v8 }
  0x9d   : > { %v262_v9 = vpop.f32.mrf.mxu0 }
  0xad   : > { %301 = vrot.lane.b32.xlu0 %v729_v0, %s678_s30 }
  0xb5   : > { %407 = vrot.lane.b32.xlu0 %v298_v4, %s677_s29 }
 0x10c   : > { %v267_v12 = vpop.xlane.xlu0 %266 }
 0x10d   : > { %v268_v13 = vsub.f32 %v261_v7, %v267_v12 }
 0x10f   : > { %v269_v14 = vmul.f32 1.442695, %v268_v13 }
 0x111   : > { %635 = vpow2.f32 %v269_v14 }
 0x117   : > { %v636_v17 = vpop.eup %635 }
 0x118   : > { %v271_v18 = vsel %vm264_vm1, %v636_v17, 0.0 }
 0x119   : > { %272 = vadd.xlane.f32.xlu1 %v271_v18 }
 0x11f   : > { %v302_v19 = vpop.permute.xlu0 %301 }
 0x120   : > { %v307_v22 = vsel %vm244_vm0, %v302_v19, 0 }
 0x121   : > { %316 = vmatpush.bf16.xpose.msra.mxu2 %v307_v22 }
 0x127   : > { %v408_v20 = vpop.permute.xlu0 %407 }
 0x128   : > { %594 = vmatmul.msk.bf16.vlgmr.msrb.gmra.mxu0 %vm244_vm0, %v408_v20 }
 0x132   : > { %299 = vrot.lane.b32.xlu1 %v298_v4, %s678_s30 }
 0x18c   : > { %v273_v23 = vpop.xlane.xlu1 %272 }
 0x18d   : > { %637 = vrcp.f32 %v273_v23 }
 0x193   : > { %v638_v24 = vpop.eup %637 }
 0x194   : > { %v275_v25 = vmul.f32 %v638_v24, %v636_v17 }
 0x196   : > { %v276_v26 = vpack.c.bf16 %v275_v25, %v275_v25 }
 0x198   : > { %589 = vmatmul.msk.bf16.vlgmr.msra.gmra.mxu1 %vm264_vm1, %v276_v26 }
 0x1a4   : > { %v300_v27 = vpop.permute.xlu1 %299 }
 0x1a5   : > { %590 = vmatmul.msk.bf16.vlgmr.msra.gmra.mxu2 %vm244_vm0, %v300_v27  ;;  %v426_v29 = vpop.f32.mrf.mxu0 }
 0x1a6   : > { %v427_v30 = vadd.f32 %v634_v5, %v426_v29 }
 0x1a8   : > { %592 = vmatmul.msk.bf16.vlgmr.msrb.gmra.mxu1 %vm244_vm0, %v354_v28  ;;  %v430_v31 = vsel %vm264_vm1, %v427_v30, -inf }
 0x1a9   : > { %431 = vmax.xlane.f32.xlu0 %v430_v31 }
 0x1ad   : > { %v428_v32 = vpop.f32.mrf.mxu0 }
 0x215   : > { %v758_v33 = vpop.f32.mrf.mxu1 }
 0x21c   : > { %v432_v45 = vpop.xlane.xlu0 %431 }
 0x21d   : > { %v294_v34 = vpop.f32.mrf.mxu1  ;;  %v433_v49 = vsub.f32 %v427_v30, %v432_v45 }
 0x21f   : > { %v434_v51 = vmul.f32 1.442695, %v433_v49 }
 0x225   : > { %v372_v35 = vpop.f32.mrf.mxu1 }
 0x226   : > { %v373_v36 = vadd.f32 %v634_v5, %v372_v35 }
 0x228   : > { %v318_v37 = vpop.f32.mrf.mxu2  ;;  %v376_v38 = vsel %vm264_vm1, %v373_v36, -inf }
 0x229   : > { %v319_v39 = vadd.f32 %v634_v5, %v318_v37  ;;  %377 = vmax.xlane.f32.xlu1 %v376_v38 }
 0x22b   : > { %v322_v40 = vsel %vm264_vm1, %v319_v39, -inf }
 0x22c   : > { %323 = vmax.xlane.f32.xlu2 %v322_v40 }
 0x22d   : > { %v374_v41 = vpop.f32.mrf.mxu1 }
 0x230   : > { %v320_v42 = vpop.f32.mrf.mxu2 }
 0x242   : > { %334 = vrot.lane.b32.xlu1 %v729_v0, %s679_s4 }
 0x29c   : > { %v378_v43 = vpop.xlane.xlu1 %377 }
 0x29d   : > { %v379_v44 = vsub.f32 %v373_v36, %v378_v43 }
 0x29f   : > { %v380_v46 = vmul.f32 1.442695, %v379_v44  ;;  %v324_v47 = vpop.xlane.xlu2 %323 }
 0x2a0   : > { %v325_v48 = vsub.f32 %v319_v39, %v324_v47 }
 0x2a1   : > { %639 = vpow2.f32 %v380_v46 }
 0x2a2   : > { %v326_v50 = vmul.f32 1.442695, %v325_v48 }
 0x2a4   : > { %641 = vpow2.f32 %v326_v50 }
 0x2a5   : > { %643 = vpow2.f32 %v434_v51 }
 0x2a7   : > { %v640_v52 = vpop.eup %639 }
 0x2a8   : > { %v382_v53 = vsel %vm264_vm1, %v640_v52, 0.0 }
 0x2a9   : > { %383 = vadd.xlane.f32.xlu0 %v382_v53 }
 0x2aa   : > { %v642_v54 = vpop.eup %641 }
 0x2ab   : > { %v328_v55 = vsel %vm264_vm1, %v642_v54, 0.0  ;;  %v644_v56 = vpop.eup %643 }
 0x2ac   : > { %329 = vadd.xlane.f32.xlu2 %v328_v55  ;;  %v436_v57 = vsel %vm264_vm1, %v644_v56, 0.0 }
 0x2b4   : > { %437 = vadd.xlane.f32.xlu2 %v436_v57  ;;  %v335_v58 = vpop.permute.xlu1 %334 }
 0x2b5   : > { %347 = vmatpush.bf16.msra.mxu3 %v335_v58 }
 0x2bd   : > { %388 = vrot.lane.b32.xlu0 %v729_v0, %s680_s5 }
 0x2cc   : > { %442 = vrot.lane.b32.xlu2 %v729_v0, %s681_s6 }
 0x31c   : > { %v384_v61 = vpop.xlane.xlu0 %383 }
 0x31f   : > { %v330_v59 = vpop.xlane.xlu2 %329 }
 0x320   : > { %645 = vrcp.f32 %v330_v59 }
 0x326   : > { %v646_v60 = vpop.eup %645 }
 0x327   : > { %v438_v62 = vpop.xlane.xlu2 %437  ;;  %v332_v63 = vmul.f32 %v646_v60, %v642_v54 }
 0x328   : > { %647 = vrcp.f32 %v438_v62 }
 0x329   : > { %v333_v1 = vpack.c.bf16 %v332_v63, %v332_v63  ;;  %649 = vrcp.f32 %v384_v61 }
 0x32b   : > { %591 = vmatmul.msk.bf16.vlgmr.msra.gmra.mxu3 %vm264_vm1, %v333_v1 }
 0x32e   : > { %v648_v2 = vpop.eup %647 }
 0x32f   : > { %v440_v3 = vmul.f32 %v648_v2, %v644_v56  ;;  %v443_v4 = vpop.permute.xlu2 %442  ;;  %v389_v5 = vpop.permute.xlu0 %388 }
 0x330   : > { %401 = vmatpush.bf16.msrb.mxu3 %v389_v5  ;;  %455 = vmatpush.bf16.msrb.mxu2 %v443_v4  ;;  %v650_v6 = vpop.eup %649 }
 0x331   : > { %v441_v0 = vpack.c.bf16 %v440_v3, %v440_v3  ;;  %v386_v7 = vmul.f32 %v650_v6, %v640_v52 }
 0x333   : > { %595 = vmatmul.msk.bf16.vlgmr.msrb.gmra.mxu2 %vm264_vm1, %v441_v0  ;;  %v387_v8 = vpack.c.bf16 %v386_v7, %v386_v7 }
 0x33b   : > { %593 = vmatmul.msk.bf16.vlgmr.msrb.gmra.mxu3 %vm264_vm1, %v387_v8 }
 0x3ae   : > { %v349_v9 = vpop.f32.mrf.mxu3 }
 0x3af   : > { %462 = vrot.lane.b32.xlu1 %v349_v9, %s682_s7 }
 0x3b6   : > { %v351_v10 = vpop.f32.mrf.mxu3  ;;  %v457_v11 = vpop.f32.mrf.mxu2 }
 0x3b7   : > { %470 = vrot.lane.b32.xlu1 %v457_v11, %s683_s8 }
 0x3be   : > { %v403_v12 = vpop.f32.mrf.mxu3  ;;  %v459_v13 = vpop.f32.mrf.mxu2 }
 0x3bf   : > { %466 = vrot.lane.b32.xlu0 %v403_v12, %s684_s9 }
 0x3c6   : > { %v405_v14 = vpop.f32.mrf.mxu3 }
 0x421   : > { %v463_v15 = vpop.permute.xlu1 %462 }
 0x422   : > { %v473_v16 = vsel %vm244_vm0, %v758_v33, %v463_v15 }
 0x429   : > { %v471_v18 = vpop.permute.xlu1 %470 }
 0x431   : > { %v467_v17 = vpop.permute.xlu0 %466 }
 0x432   : > { %v474_v19 = vsel %vm264_vm1, %v473_v16, %v467_v17 }
 0x433   : > { %v476_v20 = vsel %vm475_vm2, %v474_v19, %v471_v18 }
 0x434   : > { %v477_v21 = vpack.c.bf16 %v476_v20, %v476_v20 }
 0x436   : > { %479 = vst.msk [vmem:[%s230_s16] sm:$0xf] %vm478_vm3, %v477_v21 }
 0x437 PF: > { %s13_s14 = sadd.s32 1, %s673_s14   ;;  %s792_s12 = smov %s669_s13 }
 0x438   : > { %p10_p5 = scmp.ge.s32.totalorder %s13_s14, 4   ;;  %s793_s13 = smov %s795_s15 }
 0x43a   :  { %12 = sbr.rel (!%p10_p5) target bundleno = 2 (0x2), region = 68 }

// kernel: node_encoder_layer_forward.9
= control target key start
LH: loop header
LB: loop body
LE: loop exit
PB: predicated region body
PF: predicated region fallthrough
CT: control target
= control target key end

     0   :  { %vm30_vm0 = vcmask 261120   ;;  %s440_s0 = inlined_call_operand.vmem [shape: f32[16,32], index: 0, kind: input, shape index: {}]   ;;  %s441_s1 = inlined_call_operand.vmem [shape: f32[1,32], index: 1, kind: input, shape index: {}]   ;;  %s442_s2 = inlined_call_operand.vmem [shape: f32[1,32], index: 2, kind: input, shape index: {}]   ;;  %s443_s3 = inlined_call_operand.vmem [shape: bf16[32,64], index: 3, kind: input, shape index: {}]   ;;  %s444_s4 = inlined_call_operand.vmem [shape: f32[1,64], index: 4, kind: input, shape index: {}]   ;;  %s445_s5 = inlined_call_operand.vmem [shape: bf16[64,32], index: 5, kind: input, shape index: {}]   ;;  %s446_s6 = inlined_call_operand.vmem [shape: f32[1,32], index: 6, kind: input, shape index: {}]   ;;  %s447_s7 = inlined_call_operand.hbm [shape: f32[16,32], index: 7, kind: output, shape index: {}]  }
   0x1   :  { %v377_v0 = vld [vmem:[%s440_s0] sm:$0xff] }
   0x2   :  { %v31_v1 = vsel %vm30_vm0, %v377_v0, 0.0 }
   0x3   :  { %32 = vadd.xlane.f32.xlu0 %v31_v1 }
   0x4   :  { %12 = vsyncpa [#allocation3], 0  ;;  %v384_v2 = vld [vmem:[%s440_s0 + $0x8] sm:$0xff]  ;;  %v329_v4 = vmov 32.0   ;;  %v330_v21 = vmov 31.0   ;;  %v276_v30 = vld [vmem:[%s443_s3] sm:$0xff] }
   0x5   :  { %v34_v3 = vsel %vm30_vm0, %v384_v2, 0.0  ;;  %291 = vrcp.f32 %v329_v4  ;;  %v277_v28 = vld [vmem:[%s443_s3 + $0x8] sm:$0xff]  ;;  %vm210_vm15 = vcmask 523264   ;;  %s238_s23 = sshll.u32 %s447_s7, 4  ;;  %s333_s24 = smov 8   ;;  %s239_s23 = int_to_ptr.hbm [resolvable:$true] %s238_s23 }
   0x6   :  { %293 = vrcp.f32 %v330_v21  ;;  %163 = vmatpush.bf16.msra.mxu0 %v277_v28  ;;  %v289_v28 = vld [vmem:[%s444_s4] ss:$0 sm:$0xff] }
   0xa   :  { %164 = vmatpush.bf16.msra.mxu0 %v276_v30 }
   0xb   :  { %35 = vadd.xlane.f32.xlu0 %v34_v3  ;;  %v292_v5 = vpop.eup %291  ;;  %v287_v3 = vld [vmem:[%s441_s1] ss:$0 sm:$0xff] }
   0xc   :  { %v38_v6 = vmul.f32 32.0, %v292_v5  ;;  %vm42_vm1 = vweird.f32 %v292_v5  ;;  %v294_v22 = vpop.eup %293 }
   0xd   :  { %v57_v23 = vmul.f32 31.0, %v294_v22  ;;  %vm61_vm2 = vweird.f32 %v294_v22 }
   0xe   :  { %v39_v7 = vsub.f32 1.0, %v38_v6 }
   0xf   :  { %v58_v24 = vsub.f32 1.0, %v57_v23 }
  0x10   :  { %v40_v8 = vmul.f32 %v292_v5, %v39_v7 }
  0x11   :  { %v59_v25 = vmul.f32 %v294_v22, %v58_v24 }
  0x12   :  { %v41_v9 = vadd.f32 %v292_v5, %v40_v8 }
  0x13   :  { %v60_v26 = vadd.f32 %v294_v22, %v59_v25  ;;  %v279_v25 = vld [vmem:[%s445_s5 + $0x8] sm:$0xff] }
  0x14   :  { %v43_v10 = vsel %vm42_vm1, %v292_v5, %v41_v9 }
  0x15   :  { %v62_v27 = vsel %vm61_vm2, %v294_v22, %v60_v26  ;;  %v278_v26 = vld [vmem:[%s445_s5] sm:$0xff] }
  0x76   :  { %v33_v11 = vpop.xlane.xlu0 %32 }
  0x77   :  { %v44_v12 = vmul.f32 %v43_v10, %v33_v11 }
  0x79   :  { %v389_v13 = vsub.f32 %v377_v0, %v44_v12 }
  0x7b   :  { %v48_v14 = vmul.f32 %v389_v13, %v389_v13  ;;  %v93_v11 = vmul.f32 %v287_v3, %v389_v13  ;;  %v281_v13 = vld [vmem:[%s445_s5 + $0x18] sm:$0xff] }
  0x7c   :  { %218 = vmatpush.bf16.msra.mxu1 %v281_v13 }
  0x7d   :  { %v50_v15 = vsel %vm30_vm0, %v48_v14, 0.0 }
  0x7e   :  { %51 = vadd.xlane.f32.xlu1 %v50_v15  ;;  %v36_v16 = vpop.xlane.xlu0 %35 }
  0x7f   :  { %v45_v17 = vmul.f32 %v43_v10, %v36_v16 }
  0x81   :  { %v395_v18 = vsub.f32 %v384_v2, %v45_v17 }
  0x83   :  { %v49_v19 = vmul.f32 %v395_v18, %v395_v18  ;;  %v94_v15 = vmul.f32 %v287_v3, %v395_v18  ;;  %v280_v18 = vld [vmem:[%s445_s5 + $0x10] sm:$0xff]  ;;  %s331_s5 = smov [#allocation2]  }
  0x84   :  { %219 = vmatpush.bf16.msra.mxu1 %v280_v18  ;;  %s236_s4 = sshll.u32 %s331_s5, 4  ;;  %s237_s4 = int_to_ptr.vmem [resolvable:$true] %s236_s4 }
  0x85   :  { %v53_v20 = vsel %vm30_vm0, %v49_v19, 0.0  ;;  %v288_v19 = vld [vmem:[%s442_s2] ss:$0 sm:$0xff] }
  0x86   :  { %54 = vadd.xlane.f32.xlu1 %v53_v20 }
  0x88   :  { %220 = vmatpush.bf16.msra.mxu1 %v279_v25 }
  0x8c   :  { %221 = vmatpush.bf16.msra.mxu1 %v278_v26 }
  0xf1   :  { %v52_v29 = vpop.xlane.xlu1 %51 }
  0xf2   :  { %v63_v31 = vmul.f32 %v62_v27, %v52_v29 }
  0xf4   :  { %295 = vrsqrt.f32 %v63_v31  ;;  %vm72_vm3 = vcmp.eq.f32.partialorder %v63_v31, inf  ;;  %v75_v44 = vand.u32 2147483648, %v63_v31  ;;  %vm74_vm4 = vcmp.eq.f32.partialorder %v63_v31, 0.0 }
  0xf9   :  { %v55_v32 = vpop.xlane.xlu1 %54 }
  0xfa   :  { %v296_v33 = vpop.eup %295  ;;  %v64_v34 = vmul.f32 %v62_v27, %v55_v32 }
  0xfb   :  { %v66_v35 = vmul.f32 %v296_v33, %v63_v31 }
  0xfc   :  { %297 = vrsqrt.f32 %v64_v34  ;;  %vm84_vm5 = vcmp.eq.f32.partialorder %v64_v34, inf  ;;  %v87_v52 = vand.u32 2147483648, %v64_v34  ;;  %vm86_vm6 = vcmp.eq.f32.partialorder %v64_v34, 0.0 }
  0xfd   :  { %v67_v36 = vmul.f32 %v296_v33, %v66_v35  ;;  %v290_v35 = vld [vmem:[%s446_s6] ss:$0 sm:$0xff]  ;;  %s332_s6 = smov 128  }
  0xff   :  { %v68_v37 = vmul.f32 0.5, %v67_v36 }
 0x101   :  { %v69_v38 = vsub.f32 1.5, %v68_v37 }
 0x102   :  { %v298_v39 = vpop.eup %297 }
 0x103   :  { %v70_v40 = vmul.f32 %v296_v33, %v69_v38  ;;  %v78_v41 = vmul.f32 %v298_v39, %v64_v34 }
 0x105   :  { %v71_v42 = vmul.f32 %v70_v40, %v63_v31  ;;  %v79_v43 = vmul.f32 %v298_v39, %v78_v41 }
 0x107   :  { %v73_v45 = vsel %vm72_vm3, %v63_v31, %v71_v42  ;;  %v80_v46 = vmul.f32 0.5, %v79_v43 }
 0x108   :  { %v76_v47 = vsel %vm74_vm4, %v75_v44, %v73_v45 }
 0x109   :  { %v81_v48 = vsub.f32 1.5, %v80_v46  ;;  %v95_v49 = vadd.f32 1e-06, %v76_v47 }
 0x10b   :  { %v82_v50 = vmul.f32 %v298_v39, %v81_v48  ;;  %299 = vrcp.f32 %v95_v49  ;;  %v108_v62 = vand.u32 2147483648, %v95_v49  ;;  %vm102_vm8 = vweird.f32 %v95_v49 }
 0x10c   :  { %v106_v63 = vand.u32 2147483647, %v95_v49 }
 0x10d   :  { %v83_v51 = vmul.f32 %v82_v50, %v64_v34  ;;  %v109_v6 = vor.u32 1.1754944e-38, %v108_v62 }
 0x10e   :  { %vm107_vm10 = vcmp.eq.f32.partialorder %v106_v63, 8.507059e+37 }
 0x10f   :  { %v85_v53 = vsel %vm84_vm5, %v64_v34, %v83_v51 }
 0x110   :  { %v88_v54 = vsel %vm86_vm6, %v87_v52, %v85_v53 }
 0x111   :  { %v300_v55 = vpop.eup %299  ;;  %v96_v56 = vadd.f32 1e-06, %v88_v54 }
 0x112   :  { %v98_v57 = vmul.f32 %v300_v55, %v95_v49  ;;  %vm103_vm7 = vweird.f32 %v300_v55 }
 0x113   :  { %301 = vrcp.f32 %v96_v56  ;;  %vm104_vm9 = vmor %vm102_vm8, %vm103_vm7  ;;  %v123_v7 = vand.u32 2147483648, %v96_v56  ;;  %v121_v9 = vand.u32 2147483647, %v96_v56  ;;  %vm117_vm12 = vweird.f32 %v96_v56 }
 0x114   :  { %v99_v58 = vsub.f32 1.0, %v98_v57 }
 0x115   :  { %v124_v14 = vor.u32 1.1754944e-38, %v123_v7  ;;  %vm122_vm14 = vcmp.eq.f32.partialorder %v121_v9, 8.507059e+37 }
 0x116   :  { %v100_v59 = vmul.f32 %v300_v55, %v99_v58 }
 0x118   :  { %v101_v60 = vadd.f32 %v300_v55, %v100_v59 }
 0x119   :  { %v302_v61 = vpop.eup %301 }
 0x11a   :  { %v113_v1 = vmul.f32 %v302_v61, %v96_v56  ;;  %v105_v4 = vsel %vm104_vm9, %v300_v55, %v101_v60  ;;  %vm118_vm11 = vweird.f32 %v302_v61 }
 0x11b   :  { %v110_v10 = vsel %vm107_vm10, %v109_v6, %v105_v4  ;;  %vm119_vm13 = vmor %vm117_vm12, %vm118_vm11 }
 0x11c   :  { %v114_v5 = vsub.f32 1.0, %v113_v1  ;;  %v111_v16 = vmul.f32 %v110_v10, %v93_v11 }
 0x11e   :  { %v115_v8 = vmul.f32 %v302_v61, %v114_v5  ;;  %v131_v22 = vadd.f32 %v288_v19, %v111_v16 }
 0x120   :  { %v116_v12 = vadd.f32 %v302_v61, %v115_v8 }
 0x122   :  { %v120_v17 = vsel %vm119_vm13, %v302_v61, %v116_v12 }
 0x123   :  { %v125_v20 = vsel %vm122_vm14, %v124_v14, %v120_v17 }
 0x124   :  { %v126_v21 = vmul.f32 %v125_v20, %v94_v15 }
 0x126   :  { %v132_v23 = vadd.f32 %v288_v19, %v126_v21 }
 0x128   :  { %v133_v24 = vpack.c.bf16 %v132_v23, %v131_v22 }
 0x12a   :  { %258 = vmatmul.msk.bf16.vlgmr.msra.gmra.mxu0 %vm30_vm0, %v133_v24 }
 0x1a7   :  { %v166_v27 = vpop.f32.mrf.mxu0 }
 0x1a8   :  { %v167_v29 = vadd.f32 %v289_v28, %v166_v27 }
 0x1aa   :  { %v171_v32 = vmax.f32 %v167_v29, 0.0 }
 0x1af   :  { %v168_v30 = vpop.f32.mrf.mxu0 }
 0x1b0   :  { %v169_v31 = vadd.f32 %v289_v28, %v168_v30 }
 0x1b2   :  { %v172_v33 = vmax.f32 %v169_v31, 0.0 }
 0x1b4   :  { %v173_v34 = vpack.c.bf16 %v172_v33, %v171_v32 }
 0x1b6   :  { %275 = vmatmul.msk.bf16.vlgmr.msra.gmra.mxu1 %vm210_vm15, %v173_v34 }
 0x233   :  { %v223_v36 = vpop.f32.mrf.mxu1 }
 0x234   :  { %v224_v37 = vadd.f32 %v290_v35, %v223_v36 }
 0x236   :  { %v228_v38 = vadd.f32 %v224_v37, %v377_v0 }
 0x238   :  { %230 = vst.msk [vmem:[#allocation2] sm:$0xff] %vm30_vm0, %v228_v38 }
 0x23b   :  { %v225_v39 = vpop.f32.mrf.mxu1 }
 0x23c   :  { %v226_v40 = vadd.f32 %v290_v35, %v225_v39 }
 0x23e   :  { %v229_v41 = vadd.f32 %v226_v40, %v384_v2 }
 0x240   :  { %231 = vst.msk [vmem:[#allocation2 + $0x8] sm:$0xff] %vm30_vm0, %v229_v41 }
 0x241   :  { %244 = dma.vmem_to_hbm [thread:$0]  %s237_s4, 256, %s239_s23, [#allocation3], %s332_s6, %s332_s6, %s333_s24  }
 0x242   :  { %327 = dma.done.wait [#allocation3], 256  }
 0x243   :  { %328 = vsyncadd [#allocation3], 4294967040 }
 0x244   :  { %249 = vsyncpa [#allocation3], 1 }

</bundles_post_ra>
